<compile_context>
chip_gen: v6e
topology: v6e:2x2x1
jax: 0.10.0
libtpu: 0.0.40
codegen_flags: <defaults>
</compile_context>

<pallas_src>
import jax
import jax.numpy as jnp
import numpy as np
from jax.experimental import pallas as pl
from jax.experimental.pallas import tpu as pltpu


def _silu(v):
    return v * (1.0 / (1.0 + jnp.exp(-v)))


# ----------------------------- Pallas kernel ------------------------------- #
def _egnn_kernel(h0_ref, coord_ref, ea_ref, gs_ref, gd_ref, gdiff_ref, gst_ref,
                 negmask_ref,
                 win_ref, bin_ref,
                 we1s_ref, we1d_ref, we1r_ref, we1e_ref, be1_ref,
                 we2_ref, be2_ref,
                 wn1s_ref, wn1a_ref, bn1_ref, wn2_ref, bn2_ref,
                 wc1_ref, bc1_ref, wc2_ref,
                 wout_ref, bout_ref, wfc_ref, bfc_ref,
                 out_ref):
    f32 = jnp.float32
    mm = lambda a, b: jnp.dot(a, b, preferred_element_type=f32)

    n_layers = we1s_ref.shape[0]
    H = win_ref.shape[1]

    # bf16-stored gather/scatter matrices (values 0/±1, exact in bf16) -> f32 once,
    # so all MXU accumulation stays bit-faithful to the f32 reference.
    Gs = gs_ref[...].astype(f32)       # [E, N] one-hot of edge_index[0] (row)
    Gd = gd_ref[...].astype(f32)       # [E, N] one-hot of edge_index[1] (col)
    Gdiff = gdiff_ref[...].astype(f32)  # [E, N] Gs - Gd (loop-invariant)
    GsT = gst_ref[...].astype(f32)     # [N, E]
    ea = ea_ref[...]                   # [E, 1] edge_attr

    # per-node edge counts for segment-mean (clamp(min=1), as torch scatter mean);
    # loop-invariant -> hoisted, exact reciprocal (approx=True would be cheaper but
    # is kept exact to preserve the tight tolerance vs. the f32 reference).
    counts = jnp.maximum(mm(GsT, jnp.ones_like(ea)), 1.0)   # [N, 1]
    inv_counts = 1.0 / counts                               # [N, 1]

    # EGNN.embedding_in
    h = mm(h0_ref[...], win_ref[...]) + bin_ref[...]        # [N, H]
    x = coord_ref[...]                                      # [N, 3]

    for l in range(n_layers):                               # static unroll (L <= 3)
        # --- edge model: project at node granularity, then gather (exact algebra) ---
        hs_proj = mm(h, we1s_ref[l])                        # [N, H]
        ht_proj = mm(h, we1d_ref[l])                        # [N, H]
        diff = mm(Gdiff, x)                                 # x[row] - x[col]  [E, 3]
        radial = jnp.sum(diff * diff, axis=1, keepdims=True)  # [E, 1]

        m = (mm(Gs, hs_proj) + mm(Gd, ht_proj)
             + radial * we1r_ref[l]                         # [E,1]*[1,H]
             + ea * we1e_ref[l]
             + be1_ref[l])
        m = _silu(m)
        m = _silu(mm(m, we2_ref[l]) + be2_ref[l])           # edge_feat [E, H]

        # --- coord weights ---
        c = _silu(mm(m, wc1_ref[l]) + bc1_ref[l])
        c = mm(c, wc2_ref[l])                               # [E, 1]

        # --- fused scatter: one [N,E]@[E,H+3] matmul for node-agg and coord-agg ---
        agg_all = mm(GsT, jnp.concatenate([m, diff * c], axis=-1))  # [N, H+3]
        agg_h = agg_all[:, :H]                              # sum aggregation [N, H]
        agg_x = agg_all[:, H:]                              # coord sum       [N, 3]

        x = x + agg_x * inv_counts                          # mean coord update

        # --- node model: Linear(2H,H)+SiLU+Linear(H,H), residual ---
        n_out = _silu(mm(h, wn1s_ref[l]) + mm(agg_h, wn1a_ref[l]) + bn1_ref[l])
        h = h + mm(n_out, wn2_ref[l]) + bn2_ref[l]

    # EGNN.embedding_out
    h = mm(h, wout_ref[...]) + bout_ref[...]                # [N, H]

    # global_max_pool: additive -1e30 mask + single axis-1 reduce
    g = jnp.max(h[None, :, :] + negmask_ref[...][:, :, None], axis=1)  # [B, H]

    # final fc
    out_ref[...] = (mm(g, wfc_ref[...]) + bfc_ref[...]).astype(out_ref.dtype)


# ------------------------------- wrapper ----------------------------------- #
def egraph_condition_encoder(params, x, edge_index, coord, edge_attr, batch, ids,
                             num_graphs):
    N = x.shape[0]
    xf = x.astype(jnp.float32).reshape(N, -1)                  # flatten(start_dim=1)
    id_embed = params['id_embedding'][ids.astype(jnp.int32)]   # nn.Embedding lookup (glue)
    h0 = jnp.concatenate([xf, id_embed], axis=-1)              # [N, input_dim+16]

    row, col = edge_index[0], edge_index[1]
    Gs_f = jax.nn.one_hot(row, N, dtype=jnp.float32)           # [E, N]
    Gd_f = jax.nn.one_hot(col, N, dtype=jnp.float32)           # [E, N]
    # bf16 storage (values 0/±1 are exact in bf16) halves DMA/VMEM bytes
    Gs = Gs_f.astype(jnp.bfloat16)
    Gd = Gd_f.astype(jnp.bfloat16)
    Gdiff = (Gs_f - Gd_f).astype(jnp.bfloat16)                 # loop-invariant coord gather
    GsT = Gs_f.T.astype(jnp.bfloat16)                          # [N, E]

    # additive pool mask: 0 where node belongs to graph b, -1e30 otherwise   [B, N]
    member = jax.nn.one_hot(batch, num_graphs, dtype=jnp.float32).T
    negmask = (1.0 - member) * jnp.float32(-1e30)

    ea = edge_attr.astype(jnp.float32)
    coordf = coord.astype(jnp.float32)

    inputs = (h0, coordf, ea, Gs, Gd, Gdiff, GsT, negmask,
              params['win'], params['bin'],
              params['we1_src'], params['we1_dst'], params['we1_rad'],
              params['we1_ea'], params['be1'],
              params['we2'], params['be2'],
              params['wn1_self'], params['wn1_agg'], params['bn1'],
              params['wn2'], params['bn2'],
              params['wc1'], params['bc1'], params['wc2'],
              params['wout'], params['bout'], params['wfc'], params['bfc'])

    out_dim = params['wfc'].shape[1]
    return pl.pallas_call(
        _egnn_kernel,
        out_shape=jax.ShapeDtypeStruct((num_graphs, out_dim), jnp.float32),
        in_specs=[pl.BlockSpec(memory_space=pltpu.MemorySpace.VMEM)] * len(inputs),
        out_specs=pl.BlockSpec(memory_space=pltpu.MemorySpace.VMEM),
        compiler_params=pltpu.CompilerParams(vmem_limit_bytes=64 * 1024 * 1024),
    )(*inputs)


# --------------------------- deterministic params --------------------------- #
def init_params(key, input_dim, output_dim, hidden_dim, n_layers=3,
                embed_dim=16, max_embs=30):
    ks = iter(jax.random.split(key, 40))
    w = lambda shape, s=0.1: s * jax.random.normal(next(ks), shape, jnp.float32)
    H = hidden_dim
    Fin = input_dim + embed_dim
    L = n_layers
    return {
        'id_embedding': w((max_embs, embed_dim), 1.0),
        'win': w((Fin, H)), 'bin': w((1, H), 0.01),
        # edge-MLP first layer, pre-split by input block (h_src | h_dst | radial | edge_attr)
        'we1_src': w((L, H, H)), 'we1_dst': w((L, H, H)),
        'we1_rad': w((L, 1, H)), 'we1_ea': w((L, 1, H)),
        'be1': w((L, 1, H), 0.01),
        'we2': w((L, H, H)), 'be2': w((L, 1, H), 0.01),
        # node-MLP first layer, pre-split (h_self | agg)
        'wn1_self': w((L, H, H)), 'wn1_agg': w((L, H, H)), 'bn1': w((L, 1, H), 0.01),
        'wn2': w((L, H, H)), 'bn2': w((L, 1, H), 0.01),
        'wc1': w((L, H, H)), 'bc1': w((L, 1, H), 0.01),
        'wc2': w((L, H, 1), 0.001),           # xavier(gain=0.001), no bias
        'wout': w((H, H)), 'bout': w((1, H), 0.01),
        'wfc': w((H, output_dim)), 'bfc': w((1, output_dim), 0.01),
    }


# ------------------------- pure-JAX reference check ------------------------- #
def reference_forward(params, x, edge_index, coord, edge_attr, batch, ids,
                      num_graphs, n_layers):
    N = x.shape[0]
    h = jnp.concatenate([x.astype(jnp.float32).reshape(N, -1),
                         params['id_embedding'][ids]], axis=-1)
    h = h @ params['win'] + params['bin']
    xc = coord.astype(jnp.float32)
    row, col = edge_index[0], edge_index[1]
    ea = edge_attr.astype(jnp.float32)
    counts = jnp.maximum(
        jax.ops.segment_sum(jnp.ones((row.shape[0], 1), jnp.float32), row,
                            num_segments=N), 1.0)
    for l in range(n_layers):
        diff = xc[row] - xc[col]
        radial = jnp.sum(diff ** 2, axis=1, keepdims=True)
        m = (h[row] @ params['we1_src'][l] + h[col] @ params['we1_dst'][l]
             + radial * params['we1_rad'][l] + ea * params['we1_ea'][l]
             + params['be1'][l])
        m = _silu(m)
        m = _silu(m @ params['we2'][l] + params['be2'][l])
        c = _silu(m @ params['wc1'][l] + params['bc1'][l]) @ params['wc2'][l]
        xc = xc + jax.ops.segment_sum(diff * c, row, num_segments=N) / counts
        agg = jax.ops.segment_sum(m, row, num_segments=N)
        n_out = _silu(h @ params['wn1_self'][l] + agg @ params['wn1_agg'][l]
                      + params['bn1'][l])
        h = h + (n_out @ params['wn2'][l] + params['bn2'][l])
    h = h @ params['wout'] + params['bout']
    g = jax.ops.segment_max(h, batch, num_segments=num_graphs)
    return g @ params['wfc'] + params['bfc']


if __name__ == "__main__":
    key = jax.random.PRNGKey(0)
    kp, kx, kc, ke, kei, kid = jax.random.split(key, 6)

    input_dim, output_dim, hidden_dim, n_layers = 4, 8, 32, 3
    N, E, B = 8, 16, 2

    params = init_params(kp, input_dim, output_dim, hidden_dim, n_layers)

    x = jax.random.normal(kx, (N, 2, 2), jnp.float32)          # flattened -> input_dim=4
    coord = jax.random.normal(kc, (N, 3), jnp.float32)
    edge_attr = jax.random.normal(ke, (E, 1), jnp.float32)
    edge_index = jax.random.randint(kei, (2, E), 0, N, jnp.int32)
    ids = jax.random.randint(kid, (N,), 0, 30, jnp.int32)
    batch = jnp.array([0, 0, 0, 0, 1, 1, 1, 1], jnp.int32)

    out = egraph_condition_encoder(params, x, edge_index, coord, edge_attr,
                                   batch, ids, B)
    out = jax.block_until_ready(out)

    ref = reference_forward(params, x, edge_index, coord, edge_attr, batch, ids,
                            B, n_layers)
    assert out.shape == (B, output_dim)
    np.testing.assert_allclose(np.asarray(out), np.asarray(ref),
                               rtol=2e-3, atol=2e-3)
    print("KERNEL_OK")
</pallas_src>

<mosaic_0001>
module attributes {stable_mosaic.version = 11 : i64} {
  func.func @_egnn_kernel(%arg0: memref<8x20xf32, #tpu.memory_space<vmem>>, %arg1: memref<8x3xf32, #tpu.memory_space<vmem>>, %arg2: memref<16x1xf32, #tpu.memory_space<vmem>>, %arg3: memref<16x8xbf16, #tpu.memory_space<vmem>>, %arg4: memref<16x8xbf16, #tpu.memory_space<vmem>>, %arg5: memref<16x8xbf16, #tpu.memory_space<vmem>>, %arg6: memref<8x16xbf16, #tpu.memory_space<vmem>>, %arg7: memref<2x8xf32, #tpu.memory_space<vmem>>, %arg8: memref<20x32xf32, #tpu.memory_space<vmem>>, %arg9: memref<1x32xf32, #tpu.memory_space<vmem>>, %arg10: memref<3x32x32xf32, #tpu.memory_space<vmem>>, %arg11: memref<3x32x32xf32, #tpu.memory_space<vmem>>, %arg12: memref<3x1x32xf32, #tpu.memory_space<vmem>>, %arg13: memref<3x1x32xf32, #tpu.memory_space<vmem>>, %arg14: memref<3x1x32xf32, #tpu.memory_space<vmem>>, %arg15: memref<3x32x32xf32, #tpu.memory_space<vmem>>, %arg16: memref<3x1x32xf32, #tpu.memory_space<vmem>>, %arg17: memref<3x32x32xf32, #tpu.memory_space<vmem>>, %arg18: memref<3x32x32xf32, #tpu.memory_space<vmem>>, %arg19: memref<3x1x32xf32, #tpu.memory_space<vmem>>, %arg20: memref<3x32x32xf32, #tpu.memory_space<vmem>>, %arg21: memref<3x1x32xf32, #tpu.memory_space<vmem>>, %arg22: memref<3x32x32xf32, #tpu.memory_space<vmem>>, %arg23: memref<3x1x32xf32, #tpu.memory_space<vmem>>, %arg24: memref<3x32x1xf32, #tpu.memory_space<vmem>>, %arg25: memref<32x32xf32, #tpu.memory_space<vmem>>, %arg26: memref<1x32xf32, #tpu.memory_space<vmem>>, %arg27: memref<32x8xf32, #tpu.memory_space<vmem>>, %arg28: memref<1x8xf32, #tpu.memory_space<vmem>>, %arg29: memref<2x8xf32, #tpu.memory_space<vmem>>) attributes {dimension_semantics = [], scalar_prefetch = 0 : i64, scratch_operands = 0 : i64, tpu.core_type = #tpu.core_type<tc>} {
    %c0 = arith.constant 0 : index
    %c0_0 = arith.constant 0 : index
    %0 = vector.load %arg3[%c0, %c0_0] : memref<16x8xbf16, #tpu.memory_space<vmem>>, vector<16x8xbf16>
    %1 = arith.extf %0 : vector<16x8xbf16> to vector<16x8xf32>
    %c0_1 = arith.constant 0 : index
    %c0_2 = arith.constant 0 : index
    %2 = vector.load %arg4[%c0_1, %c0_2] : memref<16x8xbf16, #tpu.memory_space<vmem>>, vector<16x8xbf16>
    %3 = arith.extf %2 : vector<16x8xbf16> to vector<16x8xf32>
    %c0_3 = arith.constant 0 : index
    %c0_4 = arith.constant 0 : index
    %4 = vector.load %arg5[%c0_3, %c0_4] : memref<16x8xbf16, #tpu.memory_space<vmem>>, vector<16x8xbf16>
    %5 = arith.extf %4 : vector<16x8xbf16> to vector<16x8xf32>
    %c0_5 = arith.constant 0 : index
    %c0_6 = arith.constant 0 : index
    %6 = vector.load %arg6[%c0_5, %c0_6] : memref<8x16xbf16, #tpu.memory_space<vmem>>, vector<8x16xbf16>
    %7 = arith.extf %6 : vector<8x16xbf16> to vector<8x16xf32>
    %c0_7 = arith.constant 0 : index
    %c0_8 = arith.constant 0 : index
    %8 = vector.load %arg2[%c0_7, %c0_8] : memref<16x1xf32, #tpu.memory_space<vmem>>, vector<16x1xf32>
    %cst = arith.constant 1.000000e+00 : f32
    %9 = vector.broadcast %cst : f32 to vector<16x1xf32>
    %cst_9 = arith.constant dense<0.000000e+00> : vector<8x1xf32>
    %10 = tpu.matmul %7, %9, %cst_9 {dimension_numbers = #tpu.dot_dimension_numbers<[1], [0], [0], [1], [0, 0, 1, 1], [], []>} : vector<8x16xf32>, vector<16x1xf32>, vector<8x1xf32> -> vector<8x1xf32>
    %cst_10 = arith.constant 1.000000e+00 : f32
    %11 = vector.broadcast %cst_10 : f32 to vector<8x1xf32>
    %12 = arith.maximumf %10, %11 : vector<8x1xf32>
    %cst_11 = arith.constant 1.000000e+00 : f32
    %13 = vector.broadcast %cst_11 : f32 to vector<8x1xf32>
    %14 = arith.divf %13, %12 : vector<8x1xf32>
    %c0_12 = arith.constant 0 : index
    %c0_13 = arith.constant 0 : index
    %15 = vector.load %arg0[%c0_12, %c0_13] : memref<8x20xf32, #tpu.memory_space<vmem>>, vector<8x20xf32>
    %c0_14 = arith.constant 0 : index
    %c0_15 = arith.constant 0 : index
    %16 = vector.load %arg8[%c0_14, %c0_15] : memref<20x32xf32, #tpu.memory_space<vmem>>, vector<20x32xf32>
    %cst_16 = arith.constant dense<0.000000e+00> : vector<8x32xf32>
    %17 = tpu.matmul %15, %16, %cst_16 {dimension_numbers = #tpu.dot_dimension_numbers<[1], [0], [0], [1], [0, 0, 1, 1], [], []>} : vector<8x20xf32>, vector<20x32xf32>, vector<8x32xf32> -> vector<8x32xf32>
    %c0_17 = arith.constant 0 : index
    %c0_18 = arith.constant 0 : index
    %18 = vector.load %arg9[%c0_17, %c0_18] : memref<1x32xf32, #tpu.memory_space<vmem>>, vector<1x32xf32>
    %19 = vector.broadcast %18 : vector<1x32xf32> to vector<8x32xf32>
    %20 = arith.addf %17, %19 : vector<8x32xf32>
    %c0_19 = arith.constant 0 : index
    %c0_20 = arith.constant 0 : index
    %21 = vector.load %arg1[%c0_19, %c0_20] : memref<8x3xf32, #tpu.memory_space<vmem>>, vector<8x3xf32>
    %c0_21 = arith.constant 0 : index
    %c0_22 = arith.constant 0 : index
    %c0_23 = arith.constant 0 : index
    %22 = vector.load %arg10[%c0_21, %c0_22, %c0_23] : memref<3x32x32xf32, #tpu.memory_space<vmem>>, vector<1x32x32xf32>
    %23 = vector.shape_cast %22 : vector<1x32x32xf32> to vector<32x32xf32>
    %cst_24 = arith.constant dense<0.000000e+00> : vector<8x32xf32>
    %24 = tpu.matmul %20, %23, %cst_24 {dimension_numbers = #tpu.dot_dimension_numbers<[1], [0], [0], [1], [0, 0, 1, 1], [], []>} : vector<8x32xf32>, vector<32x32xf32>, vector<8x32xf32> -> vector<8x32xf32>
    %c0_25 = arith.constant 0 : index
    %c0_26 = arith.constant 0 : index
    %c0_27 = arith.constant 0 : index
    %25 = vector.load %arg11[%c0_25, %c0_26, %c0_27] : memref<3x32x32xf32, #tpu.memory_space<vmem>>, vector<1x32x32xf32>
    %26 = vector.shape_cast %25 : vector<1x32x32xf32> to vector<32x32xf32>
    %cst_28 = arith.constant dense<0.000000e+00> : vector<8x32xf32>
    %27 = tpu.matmul %20, %26, %cst_28 {dimension_numbers = #tpu.dot_dimension_numbers<[1], [0], [0], [1], [0, 0, 1, 1], [], []>} : vector<8x32xf32>, vector<32x32xf32>, vector<8x32xf32> -> vector<8x32xf32>
    %cst_29 = arith.constant dense<0.000000e+00> : vector<16x3xf32>
    %28 = tpu.matmul %5, %21, %cst_29 {dimension_numbers = #tpu.dot_dimension_numbers<[1], [0], [0], [1], [0, 0, 1, 1], [], []>} : vector<16x8xf32>, vector<8x3xf32>, vector<16x3xf32> -> vector<16x3xf32>
    %29 = arith.mulf %28, %28 : vector<16x3xf32>
    %cst_30 = arith.constant dense<0.000000e+00> : vector<16xf32>
    %30 = vector.multi_reduction <add>, %29, %cst_30 [1] : vector<16x3xf32> to vector<16xf32>
    %31 = vector.shape_cast %30 : vector<16xf32> to vector<16x1xf32>
    %cst_31 = arith.constant dense<0.000000e+00> : vector<16x32xf32>
    %32 = tpu.matmul %1, %24, %cst_31 {dimension_numbers = #tpu.dot_dimension_numbers<[1], [0], [0], [1], [0, 0, 1, 1], [], []>} : vector<16x8xf32>, vector<8x32xf32>, vector<16x32xf32> -> vector<16x32xf32>
    %cst_32 = arith.constant dense<0.000000e+00> : vector<16x32xf32>
    %33 = tpu.matmul %3, %27, %cst_32 {dimension_numbers = #tpu.dot_dimension_numbers<[1], [0], [0], [1], [0, 0, 1, 1], [], []>} : vector<16x8xf32>, vector<8x32xf32>, vector<16x32xf32> -> vector<16x32xf32>
    %34 = arith.addf %32, %33 : vector<16x32xf32>
    %c0_33 = arith.constant 0 : index
    %c0_34 = arith.constant 0 : index
    %c0_35 = arith.constant 0 : index
    %35 = vector.load %arg12[%c0_33, %c0_34, %c0_35] : memref<3x1x32xf32, #tpu.memory_space<vmem>>, vector<1x1x32xf32>
    %36 = vector.shape_cast %35 : vector<1x1x32xf32> to vector<1x32xf32>
    %37 = vector.broadcast %31 : vector<16x1xf32> to vector<16x32xf32>
    %38 = vector.broadcast %36 : vector<1x32xf32> to vector<16x32xf32>
    %39 = arith.mulf %37, %38 : vector<16x32xf32>
    %40 = arith.addf %34, %39 : vector<16x32xf32>
    %c0_36 = arith.constant 0 : index
    %c0_37 = arith.constant 0 : index
    %c0_38 = arith.constant 0 : index
    %41 = vector.load %arg13[%c0_36, %c0_37, %c0_38] : memref<3x1x32xf32, #tpu.memory_space<vmem>>, vector<1x1x32xf32>
    %42 = vector.shape_cast %41 : vector<1x1x32xf32> to vector<1x32xf32>
    %43 = vector.broadcast %8 : vector<16x1xf32> to vector<16x32xf32>
    %44 = vector.broadcast %42 : vector<1x32xf32> to vector<16x32xf32>
    %45 = arith.mulf %43, %44 : vector<16x32xf32>
    %46 = arith.addf %40, %45 : vector<16x32xf32>
    %c0_39 = arith.constant 0 : index
    %c0_40 = arith.constant 0 : index
    %c0_41 = arith.constant 0 : index
    %47 = vector.load %arg14[%c0_39, %c0_40, %c0_41] : memref<3x1x32xf32, #tpu.memory_space<vmem>>, vector<1x1x32xf32>
    %48 = vector.shape_cast %47 : vector<1x1x32xf32> to vector<1x32xf32>
    %49 = vector.broadcast %48 : vector<1x32xf32> to vector<16x32xf32>
    %50 = arith.addf %46, %49 : vector<16x32xf32>
    %cst_42 = arith.constant 0.000000e+00 : f32
    %51 = vector.broadcast %cst_42 : f32 to vector<16x32xf32>
    %52 = arith.subf %51, %50 : vector<16x32xf32>
    %53 = math.exp %52 : vector<16x32xf32>
    %cst_43 = arith.constant 1.000000e+00 : f32
    %54 = vector.broadcast %cst_43 : f32 to vector<16x32xf32>
    %55 = arith.addf %54, %53 : vector<16x32xf32>
    %cst_44 = arith.constant 1.000000e+00 : f32
    %56 = vector.broadcast %cst_44 : f32 to vector<16x32xf32>
    %57 = arith.divf %56, %55 : vector<16x32xf32>
    %58 = arith.mulf %50, %57 : vector<16x32xf32>
    %c0_45 = arith.constant 0 : index
    %c0_46 = arith.constant 0 : index
    %c0_47 = arith.constant 0 : index
    %59 = vector.load %arg15[%c0_45, %c0_46, %c0_47] : memref<3x32x32xf32, #tpu.memory_space<vmem>>, vector<1x32x32xf32>
    %60 = vector.shape_cast %59 : vector<1x32x32xf32> to vector<32x32xf32>
    %cst_48 = arith.constant dense<0.000000e+00> : vector<16x32xf32>
    %61 = tpu.matmul %58, %60, %cst_48 {dimension_numbers = #tpu.dot_dimension_numbers<[1], [0], [0], [1], [0, 0, 1, 1], [], []>} : vector<16x32xf32>, vector<32x32xf32>, vector<16x32xf32> -> vector<16x32xf32>
    %c0_49 = arith.constant 0 : index
    %c0_50 = arith.constant 0 : index
    %c0_51 = arith.constant 0 : index
    %62 = vector.load %arg16[%c0_49, %c0_50, %c0_51] : memref<3x1x32xf32, #tpu.memory_space<vmem>>, vector<1x1x32xf32>
    %63 = vector.shape_cast %62 : vector<1x1x32xf32> to vector<1x32xf32>
    %64 = vector.broadcast %63 : vector<1x32xf32> to vector<16x32xf32>
    %65 = arith.addf %61, %64 : vector<16x32xf32>
    %cst_52 = arith.constant 0.000000e+00 : f32
    %66 = vector.broadcast %cst_52 : f32 to vector<16x32xf32>
    %67 = arith.subf %66, %65 : vector<16x32xf32>
    %68 = math.exp %67 : vector<16x32xf32>
    %cst_53 = arith.constant 1.000000e+00 : f32
    %69 = vector.broadcast %cst_53 : f32 to vector<16x32xf32>
    %70 = arith.addf %69, %68 : vector<16x32xf32>
    %cst_54 = arith.constant 1.000000e+00 : f32
    %71 = vector.broadcast %cst_54 : f32 to vector<16x32xf32>
    %72 = arith.divf %71, %70 : vector<16x32xf32>
    %73 = arith.mulf %65, %72 : vector<16x32xf32>
    %c0_55 = arith.constant 0 : index
    %c0_56 = arith.constant 0 : index
    %c0_57 = arith.constant 0 : index
    %74 = vector.load %arg22[%c0_55, %c0_56, %c0_57] : memref<3x32x32xf32, #tpu.memory_space<vmem>>, vector<1x32x32xf32>
    %75 = vector.shape_cast %74 : vector<1x32x32xf32> to vector<32x32xf32>
    %cst_58 = arith.constant dense<0.000000e+00> : vector<16x32xf32>
    %76 = tpu.matmul %73, %75, %cst_58 {dimension_numbers = #tpu.dot_dimension_numbers<[1], [0], [0], [1], [0, 0, 1, 1], [], []>} : vector<16x32xf32>, vector<32x32xf32>, vector<16x32xf32> -> vector<16x32xf32>
    %c0_59 = arith.constant 0 : index
    %c0_60 = arith.constant 0 : index
    %c0_61 = arith.constant 0 : index
    %77 = vector.load %arg23[%c0_59, %c0_60, %c0_61] : memref<3x1x32xf32, #tpu.memory_space<vmem>>, vector<1x1x32xf32>
    %78 = vector.shape_cast %77 : vector<1x1x32xf32> to vector<1x32xf32>
    %79 = vector.broadcast %78 : vector<1x32xf32> to vector<16x32xf32>
    %80 = arith.addf %76, %79 : vector<16x32xf32>
    %cst_62 = arith.constant 0.000000e+00 : f32
    %81 = vector.broadcast %cst_62 : f32 to vector<16x32xf32>
    %82 = arith.subf %81, %80 : vector<16x32xf32>
    %83 = math.exp %82 : vector<16x32xf32>
    %cst_63 = arith.constant 1.000000e+00 : f32
    %84 = vector.broadcast %cst_63 : f32 to vector<16x32xf32>
    %85 = arith.addf %84, %83 : vector<16x32xf32>
    %cst_64 = arith.constant 1.000000e+00 : f32
    %86 = vector.broadcast %cst_64 : f32 to vector<16x32xf32>
    %87 = arith.divf %86, %85 : vector<16x32xf32>
    %88 = arith.mulf %80, %87 : vector<16x32xf32>
    %c0_65 = arith.constant 0 : index
    %c0_66 = arith.constant 0 : index
    %c0_67 = arith.constant 0 : index
    %89 = vector.load %arg24[%c0_65, %c0_66, %c0_67] : memref<3x32x1xf32, #tpu.memory_space<vmem>>, vector<1x32x1xf32>
    %90 = vector.shape_cast %89 : vector<1x32x1xf32> to vector<32x1xf32>
    %cst_68 = arith.constant dense<0.000000e+00> : vector<16x1xf32>
    %91 = tpu.matmul %88, %90, %cst_68 {dimension_numbers = #tpu.dot_dimension_numbers<[1], [0], [0], [1], [0, 0, 1, 1], [], []>} : vector<16x32xf32>, vector<32x1xf32>, vector<16x1xf32> -> vector<16x1xf32>
    %92 = vector.broadcast %91 : vector<16x1xf32> to vector<16x3xf32>
    %93 = arith.mulf %28, %92 : vector<16x3xf32>
    %94 = tpu.concatenate %73, %93 in 1 : vector<16x32xf32>, vector<16x3xf32> -> vector<16x35xf32>
    %cst_69 = arith.constant dense<0.000000e+00> : vector<8x35xf32>
    %95 = tpu.matmul %7, %94, %cst_69 {dimension_numbers = #tpu.dot_dimension_numbers<[1], [0], [0], [1], [0, 0, 1, 1], [], []>} : vector<8x16xf32>, vector<16x35xf32>, vector<8x35xf32> -> vector<8x35xf32>
    %96 = vector.extract_strided_slice %95 {offsets = [0, 0], sizes = [8, 32], strides = [1, 1]} : vector<8x35xf32> to vector<8x32xf32>
    %97 = vector.extract_strided_slice %95 {offsets = [0, 32], sizes = [8, 3], strides = [1, 1]} : vector<8x35xf32> to vector<8x3xf32>
    %98 = vector.broadcast %14 : vector<8x1xf32> to vector<8x3xf32>
    %99 = arith.mulf %97, %98 : vector<8x3xf32>
    %100 = arith.addf %21, %99 : vector<8x3xf32>
    %c0_70 = arith.constant 0 : index
    %c0_71 = arith.constant 0 : index
    %c0_72 = arith.constant 0 : index
    %101 = vector.load %arg17[%c0_70, %c0_71, %c0_72] : memref<3x32x32xf32, #tpu.memory_space<vmem>>, vector<1x32x32xf32>
    %102 = vector.shape_cast %101 : vector<1x32x32xf32> to vector<32x32xf32>
    %cst_73 = arith.constant dense<0.000000e+00> : vector<8x32xf32>
    %103 = tpu.matmul %20, %102, %cst_73 {dimension_numbers = #tpu.dot_dimension_numbers<[1], [0], [0], [1], [0, 0, 1, 1], [], []>} : vector<8x32xf32>, vector<32x32xf32>, vector<8x32xf32> -> vector<8x32xf32>
    %c0_74 = arith.constant 0 : index
    %c0_75 = arith.constant 0 : index
    %c0_76 = arith.constant 0 : index
    %104 = vector.load %arg18[%c0_74, %c0_75, %c0_76] : memref<3x32x32xf32, #tpu.memory_space<vmem>>, vector<1x32x32xf32>
    %105 = vector.shape_cast %104 : vector<1x32x32xf32> to vector<32x32xf32>
    %cst_77 = arith.constant dense<0.000000e+00> : vector<8x32xf32>
    %106 = tpu.matmul %96, %105, %cst_77 {dimension_numbers = #tpu.dot_dimension_numbers<[1], [0], [0], [1], [0, 0, 1, 1], [], []>} : vector<8x32xf32>, vector<32x32xf32>, vector<8x32xf32> -> vector<8x32xf32>
    %107 = arith.addf %103, %106 : vector<8x32xf32>
    %c0_78 = arith.constant 0 : index
    %c0_79 = arith.constant 0 : index
    %c0_80 = arith.constant 0 : index
    %108 = vector.load %arg19[%c0_78, %c0_79, %c0_80] : memref<3x1x32xf32, #tpu.memory_space<vmem>>, vector<1x1x32xf32>
    %109 = vector.shape_cast %108 : vector<1x1x32xf32> to vector<1x32xf32>
    %110 = vector.broadcast %109 : vector<1x32xf32> to vector<8x32xf32>
    %111 = arith.addf %107, %110 : vector<8x32xf32>
    %cst_81 = arith.constant 0.000000e+00 : f32
    %112 = vector.broadcast %cst_81 : f32 to vector<8x32xf32>
    %113 = arith.subf %112, %111 : vector<8x32xf32>
    %114 = math.exp %113 : vector<8x32xf32>
    %cst_82 = arith.constant 1.000000e+00 : f32
    %115 = vector.broadcast %cst_82 : f32 to vector<8x32xf32>
    %116 = arith.addf %115, %114 : vector<8x32xf32>
    %cst_83 = arith.constant 1.000000e+00 : f32
    %117 = vector.broadcast %cst_83 : f32 to vector<8x32xf32>
    %118 = arith.divf %117, %116 : vector<8x32xf32>
    %119 = arith.mulf %111, %118 : vector<8x32xf32>
    %c0_84 = arith.constant 0 : index
    %c0_85 = arith.constant 0 : index
    %c0_86 = arith.constant 0 : index
    %120 = vector.load %arg20[%c0_84, %c0_85, %c0_86] : memref<3x32x32xf32, #tpu.memory_space<vmem>>, vector<1x32x32xf32>
    %121 = vector.shape_cast %120 : vector<1x32x32xf32> to vector<32x32xf32>
    %cst_87 = arith.constant dense<0.000000e+00> : vector<8x32xf32>
    %122 = tpu.matmul %119, %121, %cst_87 {dimension_numbers = #tpu.dot_dimension_numbers<[1], [0], [0], [1], [0, 0, 1, 1], [], []>} : vector<8x32xf32>, vector<32x32xf32>, vector<8x32xf32> -> vector<8x32xf32>
    %123 = arith.addf %20, %122 : vector<8x32xf32>
    %c0_88 = arith.constant 0 : index
    %c0_89 = arith.constant 0 : index
    %c0_90 = arith.constant 0 : index
    %124 = vector.load %arg21[%c0_88, %c0_89, %c0_90] : memref<3x1x32xf32, #tpu.memory_space<vmem>>, vector<1x1x32xf32>
    %125 = vector.shape_cast %124 : vector<1x1x32xf32> to vector<1x32xf32>
    %126 = vector.broadcast %125 : vector<1x32xf32> to vector<8x32xf32>
    %127 = arith.addf %123, %126 : vector<8x32xf32>
    %c1 = arith.constant 1 : index
    %c0_91 = arith.constant 0 : index
    %c0_92 = arith.constant 0 : index
    %128 = vector.load %arg10[%c1, %c0_91, %c0_92] : memref<3x32x32xf32, #tpu.memory_space<vmem>>, vector<1x32x32xf32>
    %129 = vector.shape_cast %128 : vector<1x32x32xf32> to vector<32x32xf32>
    %cst_93 = arith.constant dense<0.000000e+00> : vector<8x32xf32>
    %130 = tpu.matmul %127, %129, %cst_93 {dimension_numbers = #tpu.dot_dimension_numbers<[1], [0], [0], [1], [0, 0, 1, 1], [], []>} : vector<8x32xf32>, vector<32x32xf32>, vector<8x32xf32> -> vector<8x32xf32>
    %c1_94 = arith.constant 1 : index
    %c0_95 = arith.constant 0 : index
    %c0_96 = arith.constant 0 : index
    %131 = vector.load %arg11[%c1_94, %c0_95, %c0_96] : memref<3x32x32xf32, #tpu.memory_space<vmem>>, vector<1x32x32xf32>
    %132 = vector.shape_cast %131 : vector<1x32x32xf32> to vector<32x32xf32>
    %cst_97 = arith.constant dense<0.000000e+00> : vector<8x32xf32>
    %133 = tpu.matmul %127, %132, %cst_97 {dimension_numbers = #tpu.dot_dimension_numbers<[1], [0], [0], [1], [0, 0, 1, 1], [], []>} : vector<8x32xf32>, vector<32x32xf32>, vector<8x32xf32> -> vector<8x32xf32>
    %cst_98 = arith.constant dense<0.000000e+00> : vector<16x3xf32>
    %134 = tpu.matmul %5, %100, %cst_98 {dimension_numbers = #tpu.dot_dimension_numbers<[1], [0], [0], [1], [0, 0, 1, 1], [], []>} : vector<16x8xf32>, vector<8x3xf32>, vector<16x3xf32> -> vector<16x3xf32>
    %135 = arith.mulf %134, %134 : vector<16x3xf32>
    %cst_99 = arith.constant dense<0.000000e+00> : vector<16xf32>
    %136 = vector.multi_reduction <add>, %135, %cst_99 [1] : vector<16x3xf32> to vector<16xf32>
    %137 = vector.shape_cast %136 : vector<16xf32> to vector<16x1xf32>
    %cst_100 = arith.constant dense<0.000000e+00> : vector<16x32xf32>
    %138 = tpu.matmul %1, %130, %cst_100 {dimension_numbers = #tpu.dot_dimension_numbers<[1], [0], [0], [1], [0, 0, 1, 1], [], []>} : vector<16x8xf32>, vector<8x32xf32>, vector<16x32xf32> -> vector<16x32xf32>
    %cst_101 = arith.constant dense<0.000000e+00> : vector<16x32xf32>
    %139 = tpu.matmul %3, %133, %cst_101 {dimension_numbers = #tpu.dot_dimension_numbers<[1], [0], [0], [1], [0, 0, 1, 1], [], []>} : vector<16x8xf32>, vector<8x32xf32>, vector<16x32xf32> -> vector<16x32xf32>
    %140 = arith.addf %138, %139 : vector<16x32xf32>
    %c1_102 = arith.constant 1 : index
    %c0_103 = arith.constant 0 : index
    %c0_104 = arith.constant 0 : index
    %141 = vector.load %arg12[%c1_102, %c0_103, %c0_104] : memref<3x1x32xf32, #tpu.memory_space<vmem>>, vector<1x1x32xf32>
    %142 = vector.shape_cast %141 : vector<1x1x32xf32> to vector<1x32xf32>
    %143 = vector.broadcast %137 : vector<16x1xf32> to vector<16x32xf32>
    %144 = vector.broadcast %142 : vector<1x32xf32> to vector<16x32xf32>
    %145 = arith.mulf %143, %144 : vector<16x32xf32>
    %146 = arith.addf %140, %145 : vector<16x32xf32>
    %c1_105 = arith.constant 1 : index
    %c0_106 = arith.constant 0 : index
    %c0_107 = arith.constant 0 : index
    %147 = vector.load %arg13[%c1_105, %c0_106, %c0_107] : memref<3x1x32xf32, #tpu.memory_space<vmem>>, vector<1x1x32xf32>
    %148 = vector.shape_cast %147 : vector<1x1x32xf32> to vector<1x32xf32>
    %149 = vector.broadcast %8 : vector<16x1xf32> to vector<16x32xf32>
    %150 = vector.broadcast %148 : vector<1x32xf32> to vector<16x32xf32>
    %151 = arith.mulf %149, %150 : vector<16x32xf32>
    %152 = arith.addf %146, %151 : vector<16x32xf32>
    %c1_108 = arith.constant 1 : index
    %c0_109 = arith.constant 0 : index
    %c0_110 = arith.constant 0 : index
    %153 = vector.load %arg14[%c1_108, %c0_109, %c0_110] : memref<3x1x32xf32, #tpu.memory_space<vmem>>, vector<1x1x32xf32>
    %154 = vector.shape_cast %153 : vector<1x1x32xf32> to vector<1x32xf32>
    %155 = vector.broadcast %154 : vector<1x32xf32> to vector<16x32xf32>
    %156 = arith.addf %152, %155 : vector<16x32xf32>
    %cst_111 = arith.constant 0.000000e+00 : f32
    %157 = vector.broadcast %cst_111 : f32 to vector<16x32xf32>
    %158 = arith.subf %157, %156 : vector<16x32xf32>
    %159 = math.exp %158 : vector<16x32xf32>
    %cst_112 = arith.constant 1.000000e+00 : f32
    %160 = vector.broadcast %cst_112 : f32 to vector<16x32xf32>
    %161 = arith.addf %160, %159 : vector<16x32xf32>
    %cst_113 = arith.constant 1.000000e+00 : f32
    %162 = vector.broadcast %cst_113 : f32 to vector<16x32xf32>
    %163 = arith.divf %162, %161 : vector<16x32xf32>
    %164 = arith.mulf %156, %163 : vector<16x32xf32>
    %c1_114 = arith.constant 1 : index
    %c0_115 = arith.constant 0 : index
    %c0_116 = arith.constant 0 : index
    %165 = vector.load %arg15[%c1_114, %c0_115, %c0_116] : memref<3x32x32xf32, #tpu.memory_space<vmem>>, vector<1x32x32xf32>
    %166 = vector.shape_cast %165 : vector<1x32x32xf32> to vector<32x32xf32>
    %cst_117 = arith.constant dense<0.000000e+00> : vector<16x32xf32>
    %167 = tpu.matmul %164, %166, %cst_117 {dimension_numbers = #tpu.dot_dimension_numbers<[1], [0], [0], [1], [0, 0, 1, 1], [], []>} : vector<16x32xf32>, vector<32x32xf32>, vector<16x32xf32> -> vector<16x32xf32>
    %c1_118 = arith.constant 1 : index
    %c0_119 = arith.constant 0 : index
    %c0_120 = arith.constant 0 : index
    %168 = vector.load %arg16[%c1_118, %c0_119, %c0_120] : memref<3x1x32xf32, #tpu.memory_space<vmem>>, vector<1x1x32xf32>
    %169 = vector.shape_cast %168 : vector<1x1x32xf32> to vector<1x32xf32>
    %170 = vector.broadcast %169 : vector<1x32xf32> to vector<16x32xf32>
    %171 = arith.addf %167, %170 : vector<16x32xf32>
    %cst_121 = arith.constant 0.000000e+00 : f32
    %172 = vector.broadcast %cst_121 : f32 to vector<16x32xf32>
    %173 = arith.subf %172, %171 : vector<16x32xf32>
    %174 = math.exp %173 : vector<16x32xf32>
    %cst_122 = arith.constant 1.000000e+00 : f32
    %175 = vector.broadcast %cst_122 : f32 to vector<16x32xf32>
    %176 = arith.addf %175, %174 : vector<16x32xf32>
    %cst_123 = arith.constant 1.000000e+00 : f32
    %177 = vector.broadcast %cst_123 : f32 to vector<16x32xf32>
    %178 = arith.divf %177, %176 : vector<16x32xf32>
    %179 = arith.mulf %171, %178 : vector<16x32xf32>
    %c1_124 = arith.constant 1 : index
    %c0_125 = arith.constant 0 : index
    %c0_126 = arith.constant 0 : index
    %180 = vector.load %arg22[%c1_124, %c0_125, %c0_126] : memref<3x32x32xf32, #tpu.memory_space<vmem>>, vector<1x32x32xf32>
    %181 = vector.shape_cast %180 : vector<1x32x32xf32> to vector<32x32xf32>
    %cst_127 = arith.constant dense<0.000000e+00> : vector<16x32xf32>
    %182 = tpu.matmul %179, %181, %cst_127 {dimension_numbers = #tpu.dot_dimension_numbers<[1], [0], [0], [1], [0, 0, 1, 1], [], []>} : vector<16x32xf32>, vector<32x32xf32>, vector<16x32xf32> -> vector<16x32xf32>
    %c1_128 = arith.constant 1 : index
    %c0_129 = arith.constant 0 : index
    %c0_130 = arith.constant 0 : index
    %183 = vector.load %arg23[%c1_128, %c0_129, %c0_130] : memref<3x1x32xf32, #tpu.memory_space<vmem>>, vector<1x1x32xf32>
    %184 = vector.shape_cast %183 : vector<1x1x32xf32> to vector<1x32xf32>
    %185 = vector.broadcast %184 : vector<1x32xf32> to vector<16x32xf32>
    %186 = arith.addf %182, %185 : vector<16x32xf32>
    %cst_131 = arith.constant 0.000000e+00 : f32
    %187 = vector.broadcast %cst_131 : f32 to vector<16x32xf32>
    %188 = arith.subf %187, %186 : vector<16x32xf32>
    %189 = math.exp %188 : vector<16x32xf32>
    %cst_132 = arith.constant 1.000000e+00 : f32
    %190 = vector.broadcast %cst_132 : f32 to vector<16x32xf32>
    %191 = arith.addf %190, %189 : vector<16x32xf32>
    %cst_133 = arith.constant 1.000000e+00 : f32
    %192 = vector.broadcast %cst_133 : f32 to vector<16x32xf32>
    %193 = arith.divf %192, %191 : vector<16x32xf32>
    %194 = arith.mulf %186, %193 : vector<16x32xf32>
    %c1_134 = arith.constant 1 : index
    %c0_135 = arith.constant 0 : index
    %c0_136 = arith.constant 0 : index
    %195 = vector.load %arg24[%c1_134, %c0_135, %c0_136] : memref<3x32x1xf32, #tpu.memory_space<vmem>>, vector<1x32x1xf32>
    %196 = vector.shape_cast %195 : vector<1x32x1xf32> to vector<32x1xf32>
    %cst_137 = arith.constant dense<0.000000e+00> : vector<16x1xf32>
    %197 = tpu.matmul %194, %196, %cst_137 {dimension_numbers = #tpu.dot_dimension_numbers<[1], [0], [0], [1], [0, 0, 1, 1], [], []>} : vector<16x32xf32>, vector<32x1xf32>, vector<16x1xf32> -> vector<16x1xf32>
    %198 = vector.broadcast %197 : vector<16x1xf32> to vector<16x3xf32>
    %199 = arith.mulf %134, %198 : vector<16x3xf32>
    %200 = tpu.concatenate %179, %199 in 1 : vector<16x32xf32>, vector<16x3xf32> -> vector<16x35xf32>
    %cst_138 = arith.constant dense<0.000000e+00> : vector<8x35xf32>
    %201 = tpu.matmul %7, %200, %cst_138 {dimension_numbers = #tpu.dot_dimension_numbers<[1], [0], [0], [1], [0, 0, 1, 1], [], []>} : vector<8x16xf32>, vector<16x35xf32>, vector<8x35xf32> -> vector<8x35xf32>
    %202 = vector.extract_strided_slice %201 {offsets = [0, 0], sizes = [8, 32], strides = [1, 1]} : vector<8x35xf32> to vector<8x32xf32>
    %203 = vector.extract_strided_slice %201 {offsets = [0, 32], sizes = [8, 3], strides = [1, 1]} : vector<8x35xf32> to vector<8x3xf32>
    %204 = vector.broadcast %14 : vector<8x1xf32> to vector<8x3xf32>
    %205 = arith.mulf %203, %204 : vector<8x3xf32>
    %206 = arith.addf %100, %205 : vector<8x3xf32>
    %c1_139 = arith.constant 1 : index
    %c0_140 = arith.constant 0 : index
    %c0_141 = arith.constant 0 : index
    %207 = vector.load %arg17[%c1_139, %c0_140, %c0_141] : memref<3x32x32xf32, #tpu.memory_space<vmem>>, vector<1x32x32xf32>
    %208 = vector.shape_cast %207 : vector<1x32x32xf32> to vector<32x32xf32>
    %cst_142 = arith.constant dense<0.000000e+00> : vector<8x32xf32>
    %209 = tpu.matmul %127, %208, %cst_142 {dimension_numbers = #tpu.dot_dimension_numbers<[1], [0], [0], [1], [0, 0, 1, 1], [], []>} : vector<8x32xf32>, vector<32x32xf32>, vector<8x32xf32> -> vector<8x32xf32>
    %c1_143 = arith.constant 1 : index
    %c0_144 = arith.constant 0 : index
    %c0_145 = arith.constant 0 : index
    %210 = vector.load %arg18[%c1_143, %c0_144, %c0_145] : memref<3x32x32xf32, #tpu.memory_space<vmem>>, vector<1x32x32xf32>
    %211 = vector.shape_cast %210 : vector<1x32x32xf32> to vector<32x32xf32>
    %cst_146 = arith.constant dense<0.000000e+00> : vector<8x32xf32>
    %212 = tpu.matmul %202, %211, %cst_146 {dimension_numbers = #tpu.dot_dimension_numbers<[1], [0], [0], [1], [0, 0, 1, 1], [], []>} : vector<8x32xf32>, vector<32x32xf32>, vector<8x32xf32> -> vector<8x32xf32>
    %213 = arith.addf %209, %212 : vector<8x32xf32>
    %c1_147 = arith.constant 1 : index
    %c0_148 = arith.constant 0 : index
    %c0_149 = arith.constant 0 : index
    %214 = vector.load %arg19[%c1_147, %c0_148, %c0_149] : memref<3x1x32xf32, #tpu.memory_space<vmem>>, vector<1x1x32xf32>
    %215 = vector.shape_cast %214 : vector<1x1x32xf32> to vector<1x32xf32>
    %216 = vector.broadcast %215 : vector<1x32xf32> to vector<8x32xf32>
    %217 = arith.addf %213, %216 : vector<8x32xf32>
    %cst_150 = arith.constant 0.000000e+00 : f32
    %218 = vector.broadcast %cst_150 : f32 to vector<8x32xf32>
    %219 = arith.subf %218, %217 : vector<8x32xf32>
    %220 = math.exp %219 : vector<8x32xf32>
    %cst_151 = arith.constant 1.000000e+00 : f32
    %221 = vector.broadcast %cst_151 : f32 to vector<8x32xf32>
    %222 = arith.addf %221, %220 : vector<8x32xf32>
    %cst_152 = arith.constant 1.000000e+00 : f32
    %223 = vector.broadcast %cst_152 : f32 to vector<8x32xf32>
    %224 = arith.divf %223, %222 : vector<8x32xf32>
    %225 = arith.mulf %217, %224 : vector<8x32xf32>
    %c1_153 = arith.constant 1 : index
    %c0_154 = arith.constant 0 : index
    %c0_155 = arith.constant 0 : index
    %226 = vector.load %arg20[%c1_153, %c0_154, %c0_155] : memref<3x32x32xf32, #tpu.memory_space<vmem>>, vector<1x32x32xf32>
    %227 = vector.shape_cast %226 : vector<1x32x32xf32> to vector<32x32xf32>
    %cst_156 = arith.constant dense<0.000000e+00> : vector<8x32xf32>
    %228 = tpu.matmul %225, %227, %cst_156 {dimension_numbers = #tpu.dot_dimension_numbers<[1], [0], [0], [1], [0, 0, 1, 1], [], []>} : vector<8x32xf32>, vector<32x32xf32>, vector<8x32xf32> -> vector<8x32xf32>
    %229 = arith.addf %127, %228 : vector<8x32xf32>
    %c1_157 = arith.constant 1 : index
    %c0_158 = arith.constant 0 : index
    %c0_159 = arith.constant 0 : index
    %230 = vector.load %arg21[%c1_157, %c0_158, %c0_159] : memref<3x1x32xf32, #tpu.memory_space<vmem>>, vector<1x1x32xf32>
    %231 = vector.shape_cast %230 : vector<1x1x32xf32> to vector<1x32xf32>
    %232 = vector.broadcast %231 : vector<1x32xf32> to vector<8x32xf32>
    %233 = arith.addf %229, %232 : vector<8x32xf32>
    %c2 = arith.constant 2 : index
    %c0_160 = arith.constant 0 : index
    %c0_161 = arith.constant 0 : index
    %234 = vector.load %arg10[%c2, %c0_160, %c0_161] : memref<3x32x32xf32, #tpu.memory_space<vmem>>, vector<1x32x32xf32>
    %235 = vector.shape_cast %234 : vector<1x32x32xf32> to vector<32x32xf32>
    %cst_162 = arith.constant dense<0.000000e+00> : vector<8x32xf32>
    %236 = tpu.matmul %233, %235, %cst_162 {dimension_numbers = #tpu.dot_dimension_numbers<[1], [0], [0], [1], [0, 0, 1, 1], [], []>} : vector<8x32xf32>, vector<32x32xf32>, vector<8x32xf32> -> vector<8x32xf32>
    %c2_163 = arith.constant 2 : index
    %c0_164 = arith.constant 0 : index
    %c0_165 = arith.constant 0 : index
    %237 = vector.load %arg11[%c2_163, %c0_164, %c0_165] : memref<3x32x32xf32, #tpu.memory_space<vmem>>, vector<1x32x32xf32>
    %238 = vector.shape_cast %237 : vector<1x32x32xf32> to vector<32x32xf32>
    %cst_166 = arith.constant dense<0.000000e+00> : vector<8x32xf32>
    %239 = tpu.matmul %233, %238, %cst_166 {dimension_numbers = #tpu.dot_dimension_numbers<[1], [0], [0], [1], [0, 0, 1, 1], [], []>} : vector<8x32xf32>, vector<32x32xf32>, vector<8x32xf32> -> vector<8x32xf32>
    %cst_167 = arith.constant dense<0.000000e+00> : vector<16x3xf32>
    %240 = tpu.matmul %5, %206, %cst_167 {dimension_numbers = #tpu.dot_dimension_numbers<[1], [0], [0], [1], [0, 0, 1, 1], [], []>} : vector<16x8xf32>, vector<8x3xf32>, vector<16x3xf32> -> vector<16x3xf32>
    %241 = arith.mulf %240, %240 : vector<16x3xf32>
    %cst_168 = arith.constant dense<0.000000e+00> : vector<16xf32>
    %242 = vector.multi_reduction <add>, %241, %cst_168 [1] : vector<16x3xf32> to vector<16xf32>
    %243 = vector.shape_cast %242 : vector<16xf32> to vector<16x1xf32>
    %cst_169 = arith.constant dense<0.000000e+00> : vector<16x32xf32>
    %244 = tpu.matmul %1, %236, %cst_169 {dimension_numbers = #tpu.dot_dimension_numbers<[1], [0], [0], [1], [0, 0, 1, 1], [], []>} : vector<16x8xf32>, vector<8x32xf32>, vector<16x32xf32> -> vector<16x32xf32>
    %cst_170 = arith.constant dense<0.000000e+00> : vector<16x32xf32>
    %245 = tpu.matmul %3, %239, %cst_170 {dimension_numbers = #tpu.dot_dimension_numbers<[1], [0], [0], [1], [0, 0, 1, 1], [], []>} : vector<16x8xf32>, vector<8x32xf32>, vector<16x32xf32> -> vector<16x32xf32>
    %246 = arith.addf %244, %245 : vector<16x32xf32>
    %c2_171 = arith.constant 2 : index
    %c0_172 = arith.constant 0 : index
    %c0_173 = arith.constant 0 : index
    %247 = vector.load %arg12[%c2_171, %c0_172, %c0_173] : memref<3x1x32xf32, #tpu.memory_space<vmem>>, vector<1x1x32xf32>
    %248 = vector.shape_cast %247 : vector<1x1x32xf32> to vector<1x32xf32>
    %249 = vector.broadcast %243 : vector<16x1xf32> to vector<16x32xf32>
    %250 = vector.broadcast %248 : vector<1x32xf32> to vector<16x32xf32>
    %251 = arith.mulf %249, %250 : vector<16x32xf32>
    %252 = arith.addf %246, %251 : vector<16x32xf32>
    %c2_174 = arith.constant 2 : index
    %c0_175 = arith.constant 0 : index
    %c0_176 = arith.constant 0 : index
    %253 = vector.load %arg13[%c2_174, %c0_175, %c0_176] : memref<3x1x32xf32, #tpu.memory_space<vmem>>, vector<1x1x32xf32>
    %254 = vector.shape_cast %253 : vector<1x1x32xf32> to vector<1x32xf32>
    %255 = vector.broadcast %8 : vector<16x1xf32> to vector<16x32xf32>
    %256 = vector.broadcast %254 : vector<1x32xf32> to vector<16x32xf32>
    %257 = arith.mulf %255, %256 : vector<16x32xf32>
    %258 = arith.addf %252, %257 : vector<16x32xf32>
    %c2_177 = arith.constant 2 : index
    %c0_178 = arith.constant 0 : index
    %c0_179 = arith.constant 0 : index
    %259 = vector.load %arg14[%c2_177, %c0_178, %c0_179] : memref<3x1x32xf32, #tpu.memory_space<vmem>>, vector<1x1x32xf32>
    %260 = vector.shape_cast %259 : vector<1x1x32xf32> to vector<1x32xf32>
    %261 = vector.broadcast %260 : vector<1x32xf32> to vector<16x32xf32>
    %262 = arith.addf %258, %261 : vector<16x32xf32>
    %cst_180 = arith.constant 0.000000e+00 : f32
    %263 = vector.broadcast %cst_180 : f32 to vector<16x32xf32>
    %264 = arith.subf %263, %262 : vector<16x32xf32>
    %265 = math.exp %264 : vector<16x32xf32>
    %cst_181 = arith.constant 1.000000e+00 : f32
    %266 = vector.broadcast %cst_181 : f32 to vector<16x32xf32>
    %267 = arith.addf %266, %265 : vector<16x32xf32>
    %cst_182 = arith.constant 1.000000e+00 : f32
    %268 = vector.broadcast %cst_182 : f32 to vector<16x32xf32>
    %269 = arith.divf %268, %267 : vector<16x32xf32>
    %270 = arith.mulf %262, %269 : vector<16x32xf32>
    %c2_183 = arith.constant 2 : index
    %c0_184 = arith.constant 0 : index
    %c0_185 = arith.constant 0 : index
    %271 = vector.load %arg15[%c2_183, %c0_184, %c0_185] : memref<3x32x32xf32, #tpu.memory_space<vmem>>, vector<1x32x32xf32>
    %272 = vector.shape_cast %271 : vector<1x32x32xf32> to vector<32x32xf32>
    %cst_186 = arith.constant dense<0.000000e+00> : vector<16x32xf32>
    %273 = tpu.matmul %270, %272, %cst_186 {dimension_numbers = #tpu.dot_dimension_numbers<[1], [0], [0], [1], [0, 0, 1, 1], [], []>} : vector<16x32xf32>, vector<32x32xf32>, vector<16x32xf32> -> vector<16x32xf32>
    %c2_187 = arith.constant 2 : index
    %c0_188 = arith.constant 0 : index
    %c0_189 = arith.constant 0 : index
    %274 = vector.load %arg16[%c2_187, %c0_188, %c0_189] : memref<3x1x32xf32, #tpu.memory_space<vmem>>, vector<1x1x32xf32>
    %275 = vector.shape_cast %274 : vector<1x1x32xf32> to vector<1x32xf32>
    %276 = vector.broadcast %275 : vector<1x32xf32> to vector<16x32xf32>
    %277 = arith.addf %273, %276 : vector<16x32xf32>
    %cst_190 = arith.constant 0.000000e+00 : f32
    %278 = vector.broadcast %cst_190 : f32 to vector<16x32xf32>
    %279 = arith.subf %278, %277 : vector<16x32xf32>
    %280 = math.exp %279 : vector<16x32xf32>
    %cst_191 = arith.constant 1.000000e+00 : f32
    %281 = vector.broadcast %cst_191 : f32 to vector<16x32xf32>
    %282 = arith.addf %281, %280 : vector<16x32xf32>
    %cst_192 = arith.constant 1.000000e+00 : f32
    %283 = vector.broadcast %cst_192 : f32 to vector<16x32xf32>
    %284 = arith.divf %283, %282 : vector<16x32xf32>
    %285 = arith.mulf %277, %284 : vector<16x32xf32>
    %c2_193 = arith.constant 2 : index
    %c0_194 = arith.constant 0 : index
    %c0_195 = arith.constant 0 : index
    %286 = vector.load %arg22[%c2_193, %c0_194, %c0_195] : memref<3x32x32xf32, #tpu.memory_space<vmem>>, vector<1x32x32xf32>
    %287 = vector.shape_cast %286 : vector<1x32x32xf32> to vector<32x32xf32>
    %cst_196 = arith.constant dense<0.000000e+00> : vector<16x32xf32>
    %288 = tpu.matmul %285, %287, %cst_196 {dimension_numbers = #tpu.dot_dimension_numbers<[1], [0], [0], [1], [0, 0, 1, 1], [], []>} : vector<16x32xf32>, vector<32x32xf32>, vector<16x32xf32> -> vector<16x32xf32>
    %c2_197 = arith.constant 2 : index
    %c0_198 = arith.constant 0 : index
    %c0_199 = arith.constant 0 : index
    %289 = vector.load %arg23[%c2_197, %c0_198, %c0_199] : memref<3x1x32xf32, #tpu.memory_space<vmem>>, vector<1x1x32xf32>
    %290 = vector.shape_cast %289 : vector<1x1x32xf32> to vector<1x32xf32>
    %291 = vector.broadcast %290 : vector<1x32xf32> to vector<16x32xf32>
    %292 = arith.addf %288, %291 : vector<16x32xf32>
    %cst_200 = arith.constant 0.000000e+00 : f32
    %293 = vector.broadcast %cst_200 : f32 to vector<16x32xf32>
    %294 = arith.subf %293, %292 : vector<16x32xf32>
    %295 = math.exp %294 : vector<16x32xf32>
    %cst_201 = arith.constant 1.000000e+00 : f32
    %296 = vector.broadcast %cst_201 : f32 to vector<16x32xf32>
    %297 = arith.addf %296, %295 : vector<16x32xf32>
    %cst_202 = arith.constant 1.000000e+00 : f32
    %298 = vector.broadcast %cst_202 : f32 to vector<16x32xf32>
    %299 = arith.divf %298, %297 : vector<16x32xf32>
    %300 = arith.mulf %292, %299 : vector<16x32xf32>
    %c2_203 = arith.constant 2 : index
    %c0_204 = arith.constant 0 : index
    %c0_205 = arith.constant 0 : index
    %301 = vector.load %arg24[%c2_203, %c0_204, %c0_205] : memref<3x32x1xf32, #tpu.memory_space<vmem>>, vector<1x32x1xf32>
    %302 = vector.shape_cast %301 : vector<1x32x1xf32> to vector<32x1xf32>
    %cst_206 = arith.constant dense<0.000000e+00> : vector<16x1xf32>
    %303 = tpu.matmul %300, %302, %cst_206 {dimension_numbers = #tpu.dot_dimension_numbers<[1], [0], [0], [1], [0, 0, 1, 1], [], []>} : vector<16x32xf32>, vector<32x1xf32>, vector<16x1xf32> -> vector<16x1xf32>
    %304 = vector.broadcast %303 : vector<16x1xf32> to vector<16x3xf32>
    %305 = arith.mulf %240, %304 : vector<16x3xf32>
    %306 = tpu.concatenate %285, %305 in 1 : vector<16x32xf32>, vector<16x3xf32> -> vector<16x35xf32>
    %cst_207 = arith.constant dense<0.000000e+00> : vector<8x35xf32>
    %307 = tpu.matmul %7, %306, %cst_207 {dimension_numbers = #tpu.dot_dimension_numbers<[1], [0], [0], [1], [0, 0, 1, 1], [], []>} : vector<8x16xf32>, vector<16x35xf32>, vector<8x35xf32> -> vector<8x35xf32>
    %308 = vector.extract_strided_slice %307 {offsets = [0, 0], sizes = [8, 32], strides = [1, 1]} : vector<8x35xf32> to vector<8x32xf32>
    %c2_208 = arith.constant 2 : index
    %c0_209 = arith.constant 0 : index
    %c0_210 = arith.constant 0 : index
    %309 = vector.load %arg17[%c2_208, %c0_209, %c0_210] : memref<3x32x32xf32, #tpu.memory_space<vmem>>, vector<1x32x32xf32>
    %310 = vector.shape_cast %309 : vector<1x32x32xf32> to vector<32x32xf32>
    %cst_211 = arith.constant dense<0.000000e+00> : vector<8x32xf32>
    %311 = tpu.matmul %233, %310, %cst_211 {dimension_numbers = #tpu.dot_dimension_numbers<[1], [0], [0], [1], [0, 0, 1, 1], [], []>} : vector<8x32xf32>, vector<32x32xf32>, vector<8x32xf32> -> vector<8x32xf32>
    %c2_212 = arith.constant 2 : index
    %c0_213 = arith.constant 0 : index
    %c0_214 = arith.constant 0 : index
    %312 = vector.load %arg18[%c2_212, %c0_213, %c0_214] : memref<3x32x32xf32, #tpu.memory_space<vmem>>, vector<1x32x32xf32>
    %313 = vector.shape_cast %312 : vector<1x32x32xf32> to vector<32x32xf32>
    %cst_215 = arith.constant dense<0.000000e+00> : vector<8x32xf32>
    %314 = tpu.matmul %308, %313, %cst_215 {dimension_numbers = #tpu.dot_dimension_numbers<[1], [0], [0], [1], [0, 0, 1, 1], [], []>} : vector<8x32xf32>, vector<32x32xf32>, vector<8x32xf32> -> vector<8x32xf32>
    %315 = arith.addf %311, %314 : vector<8x32xf32>
    %c2_216 = arith.constant 2 : index
    %c0_217 = arith.constant 0 : index
    %c0_218 = arith.constant 0 : index
    %316 = vector.load %arg19[%c2_216, %c0_217, %c0_218] : memref<3x1x32xf32, #tpu.memory_space<vmem>>, vector<1x1x32xf32>
    %317 = vector.shape_cast %316 : vector<1x1x32xf32> to vector<1x32xf32>
    %318 = vector.broadcast %317 : vector<1x32xf32> to vector<8x32xf32>
    %319 = arith.addf %315, %318 : vector<8x32xf32>
    %cst_219 = arith.constant 0.000000e+00 : f32
    %320 = vector.broadcast %cst_219 : f32 to vector<8x32xf32>
    %321 = arith.subf %320, %319 : vector<8x32xf32>
    %322 = math.exp %321 : vector<8x32xf32>
    %cst_220 = arith.constant 1.000000e+00 : f32
    %323 = vector.broadcast %cst_220 : f32 to vector<8x32xf32>
    %324 = arith.addf %323, %322 : vector<8x32xf32>
    %cst_221 = arith.constant 1.000000e+00 : f32
    %325 = vector.broadcast %cst_221 : f32 to vector<8x32xf32>
    %326 = arith.divf %325, %324 : vector<8x32xf32>
    %327 = arith.mulf %319, %326 : vector<8x32xf32>
    %c2_222 = arith.constant 2 : index
    %c0_223 = arith.constant 0 : index
    %c0_224 = arith.constant 0 : index
    %328 = vector.load %arg20[%c2_222, %c0_223, %c0_224] : memref<3x32x32xf32, #tpu.memory_space<vmem>>, vector<1x32x32xf32>
    %329 = vector.shape_cast %328 : vector<1x32x32xf32> to vector<32x32xf32>
    %cst_225 = arith.constant dense<0.000000e+00> : vector<8x32xf32>
    %330 = tpu.matmul %327, %329, %cst_225 {dimension_numbers = #tpu.dot_dimension_numbers<[1], [0], [0], [1], [0, 0, 1, 1], [], []>} : vector<8x32xf32>, vector<32x32xf32>, vector<8x32xf32> -> vector<8x32xf32>
    %331 = arith.addf %233, %330 : vector<8x32xf32>
    %c2_226 = arith.constant 2 : index
    %c0_227 = arith.constant 0 : index
    %c0_228 = arith.constant 0 : index
    %332 = vector.load %arg21[%c2_226, %c0_227, %c0_228] : memref<3x1x32xf32, #tpu.memory_space<vmem>>, vector<1x1x32xf32>
    %333 = vector.shape_cast %332 : vector<1x1x32xf32> to vector<1x32xf32>
    %334 = vector.broadcast %333 : vector<1x32xf32> to vector<8x32xf32>
    %335 = arith.addf %331, %334 : vector<8x32xf32>
    %c0_229 = arith.constant 0 : index
    %c0_230 = arith.constant 0 : index
    %336 = vector.load %arg25[%c0_229, %c0_230] : memref<32x32xf32, #tpu.memory_space<vmem>>, vector<32x32xf32>
    %cst_231 = arith.constant dense<0.000000e+00> : vector<8x32xf32>
    %337 = tpu.matmul %335, %336, %cst_231 {dimension_numbers = #tpu.dot_dimension_numbers<[1], [0], [0], [1], [0, 0, 1, 1], [], []>} : vector<8x32xf32>, vector<32x32xf32>, vector<8x32xf32> -> vector<8x32xf32>
    %c0_232 = arith.constant 0 : index
    %c0_233 = arith.constant 0 : index
    %338 = vector.load %arg26[%c0_232, %c0_233] : memref<1x32xf32, #tpu.memory_space<vmem>>, vector<1x32xf32>
    %339 = vector.broadcast %338 : vector<1x32xf32> to vector<8x32xf32>
    %340 = arith.addf %337, %339 : vector<8x32xf32>
    %341 = vector.shape_cast %340 : vector<8x32xf32> to vector<1x8x32xf32>
    %c0_234 = arith.constant 0 : index
    %c0_235 = arith.constant 0 : index
    %342 = vector.load %arg7[%c0_234, %c0_235] : memref<2x8xf32, #tpu.memory_space<vmem>>, vector<2x8xf32>
    %343 = vector.shape_cast %342 : vector<2x8xf32> to vector<2x8x1xf32>
    %344 = vector.broadcast %341 : vector<1x8x32xf32> to vector<2x8x32xf32>
    %345 = vector.broadcast %343 : vector<2x8x1xf32> to vector<2x8x32xf32>
    %346 = arith.addf %344, %345 : vector<2x8x32xf32>
    %cst_236 = arith.constant dense<0xFF800000> : vector<2x32xf32>
    %347 = vector.multi_reduction <maximumf>, %346, %cst_236 [1] : vector<2x8x32xf32> to vector<2x32xf32>
    %c0_237 = arith.constant 0 : index
    %c0_238 = arith.constant 0 : index
    %348 = vector.load %arg27[%c0_237, %c0_238] : memref<32x8xf32, #tpu.memory_space<vmem>>, vector<32x8xf32>
    %cst_239 = arith.constant dense<0.000000e+00> : vector<2x8xf32>
    %349 = tpu.matmul %347, %348, %cst_239 {dimension_numbers = #tpu.dot_dimension_numbers<[1], [0], [0], [1], [0, 0, 1, 1], [], []>} : vector<2x32xf32>, vector<32x8xf32>, vector<2x8xf32> -> vector<2x8xf32>
    %c0_240 = arith.constant 0 : index
    %c0_241 = arith.constant 0 : index
    %350 = vector.load %arg28[%c0_240, %c0_241] : memref<1x8xf32, #tpu.memory_space<vmem>>, vector<1x8xf32>
    %351 = vector.broadcast %350 : vector<1x8xf32> to vector<2x8xf32>
    %352 = arith.addf %349, %351 : vector<2x8xf32>
    %c0_242 = arith.constant 0 : index
    %c0_243 = arith.constant 0 : index
    %353 = vector.load %arg29[%c0_242, %c0_243] : memref<2x8xf32, #tpu.memory_space<vmem>>, vector<2x8xf32>
    tpu.vector_store %arg29[%c0_242, %c0_243], %352 {strides = array<i32>} : memref<2x8xf32, #tpu.memory_space<vmem>>, vector<2x8xf32>,
    return
  }
}

</mosaic_0001>

<bundles_post_ra>
// kernel: tpu_custom_call.1
= control target key start
LH: loop header
LB: loop body
LE: loop exit
PB: predicated region body
PF: predicated region fallthrough
CT: control target
= control target key end

     0   :  { %s5198_s6 = smov 1   ;;  %s5199_s10 = smov 2   ;;  %s5858_s0 = inlined_call_operand.smem [shape: u32[30], index: -1, kind: input, shape index: {}] }
   0x1   :  { %s5261_s5 = sld [smem:[%s5858_s0]]   ;;  %s5200_s14 = smov 3  }
   0x2   :  { %s5266_s9 = sld [smem:[%s5858_s0 + %s5198_s6]]   ;;  %s5201_s18 = smov 4  }
   0x3   :  { %s5271_s13 = sld [smem:[%s5858_s0 + %s5199_s10]]   ;;  %s5202_s22 = smov 5  }
   0x4   :  { %s5276_s17 = sld [smem:[%s5858_s0 + %s5200_s14]]   ;;  %s5203_s26 = smov 6  }
   0x5   :  { %s5281_s21 = sld [smem:[%s5858_s0 + %s5201_s18]]   ;;  %s5204_s30 = smov 7  }
   0x6   :  { %s5286_s25 = sld [smem:[%s5858_s0 + %s5202_s22]]   ;;  %s5205_s4 = smov 8  }
   0x7   :  { %s5291_s29 = sld [smem:[%s5858_s0 + %s5203_s26]]   ;;  %s5206_s10 = smov 9  }
   0x8   :  { %5866 = sst [smem:[#allocation36_spill]] %s5266_s9  ;;  %s5207_s15 = smov 10  }
   0x9   :  { %5867 = sst [smem:[#allocation37_spill]] %s5271_s13  ;;  %s5208_s20 = smov 11  }
   0xa   :  { %5868 = sst [smem:[#allocation38_spill]] %s5276_s17  ;;  %s5209_s26 = smov 12  }
   0xb   :  { %5869 = sst [smem:[#allocation39_spill]] %s5281_s21  ;;  %s5210_s1 = smov 13  }
   0xc   :  { %5870 = sst [smem:[#allocation40_spill]] %s5286_s25  ;;  %s5211_s7 = smov 14  }
   0xd   :  { %s5296_s3 = sld [smem:[%s5858_s0 + %s5204_s30]]   ;;  %s5213_s22 = smov 16  }
   0xe   :  { %s5301_s8 = sld [smem:[%s5858_s0 + %s5205_s4]]   ;;  %s5214_s28 = smov 17  }
   0xf   :  { %s5306_s14 = sld [smem:[%s5858_s0 + %s5206_s10]]  }
  0x10   :  { %s5311_s19 = sld [smem:[%s5858_s0 + %s5207_s15]]   ;;  %s5212_s15 = smov 15  }
  0x11   :  { %s5316_s24 = sld [smem:[%s5858_s0 + %s5208_s20]]  }
  0x12   :  { %s5321_s30 = sld [smem:[%s5858_s0 + %s5209_s26]]  }
  0x13   :  { %s5326_s6 = sld [smem:[%s5858_s0 + %s5210_s1]]  }
  0x14   :  { %s5331_s12 = sld [smem:[%s5858_s0 + %s5211_s7]]   ;;  %s5215_s7 = smov 18  }
  0x15   :  { %s5336_s20 = sld [smem:[%s5858_s0 + %s5212_s15]]   ;;  %s5216_s15 = smov 19  }
  0x16   :  { %5871 = sst [smem:[#allocation41_spill]] %s5311_s19 }
  0x17   :  { %5872 = sst [smem:[#allocation42_spill]] %s5316_s24 }
  0x18   :  { %s5341_s27 = sld [smem:[%s5858_s0 + %s5213_s22]]   ;;  %s5217_s22 = smov 20  }
  0x19   :  { %s5346_s4 = sld [smem:[%s5858_s0 + %s5214_s28]]   ;;  %s5218_s28 = smov 21  }
  0x1a   :  { %s5351_s13 = sld [smem:[%s5858_s0 + %s5215_s7]]   ;;  %s5219_s7 = smov 22  }
  0x1b   :  { %s5356_s17 = sld [smem:[%s5858_s0 + %s5216_s15]]   ;;  %s5220_s15 = smov 23  }
  0x1c   :  { %s5361_s21 = sld [smem:[%s5858_s0 + %s5217_s22]]   ;;  %s5221_s22 = smov 24  }
  0x1d   :  { %s5366_s25 = sld [smem:[%s5858_s0 + %s5218_s28]]   ;;  %s5222_s28 = smov 25  }
  0x1e   :  { %s5371_s9 = sld [smem:[%s5858_s0 + %s5219_s7]]   ;;  %s5223_s7 = smov 26  }
  0x1f   :  { %s5376_s24 = sld [smem:[%s5858_s0 + %s5220_s15]]   ;;  %s5224_s15 = smov 27  }
  0x20   :  { %s5381_s19 = sld [smem:[%s5858_s0 + %s5221_s22]]   ;;  %s5225_s22 = smov 28  }
  0x23   :  { %5873 = sst [smem:[#allocation43_spill]] %s5366_s25 }
  0x24   :  { %5874 = sst [smem:[#allocation44_spill]] %s5371_s9 }
  0x25   :  { %5875 = sst [smem:[#allocation45_spill]] %s5376_s24 }
  0x26   :  { %5876 = sst [smem:[#allocation46_spill]] %s5381_s19 }
  0x27   :  { %s5386_s25 = sld [smem:[%s5858_s0 + %s5222_s28]]   ;;  %s5226_s28 = smov 29  }
  0x28   :  { %s5391_s9 = sld [smem:[%s5858_s0 + %s5223_s7]]  }
  0x29   :  { %s5396_s24 = sld [smem:[%s5858_s0 + %s5224_s15]]  }
  0x2a   :  { %s5401_s19 = sld [smem:[%s5858_s0 + %s5225_s22]]  }
  0x2d   :  { %5877 = sst [smem:[#allocation47_spill]] %s5386_s25 }
  0x2e   :  { %s5406_s25 = sld [smem:[%s5858_s0 + %s5226_s28]]  }
  0x2f   :  { %64 = vsyncpa [#allocation3], 0 }
  0x30   :  { %65 = vsyncpa [#allocation6], 0 }
  0x31   :  { %66 = vsyncpa [#allocation9], 0 }
  0x32   :  { %67 = vsyncpa [#allocation12], 0 }
  0x33   :  { %68 = vsyncpa [#allocation15], 0 }
  0x34   :  { %69 = vsyncpa [#allocation18], 0 }
  0x35   :  { %70 = vsyncpa [#allocation21], 0 }
  0x36   :  { %71 = vsyncpa [#allocation24], 0 }
  0x37   :  { %72 = vsyncpa [#allocation4], 0  ;;  %s5227_s7 = smov [#allocation5]   ;;  %s5228_s11 = smov [#allocation8]  }
  0x38   :  { %s99_s10 = sshll.u32 %s5227_s7, 4  ;;  %s118_s15 = sshll.u32 %s5228_s11, 4  ;;  %s100_s10 = int_to_ptr.vmem [resolvable:$true] %s99_s10  ;;  %s119_s15 = int_to_ptr.vmem [resolvable:$true] %s118_s15 }
  0x39   :  { %s4868_s16 = scalar_lea.vmem %s100_s10, 64  ;;  %p4873_p1 = scmp.lt.s32.totalorder %s100_s10, %s100_s10 }
  0x3a   :  { %p4869_p0 = scmp.ne.s32.totalorder %s100_s10, %s4868_s16  ;;  %p4874_p2 = scmp.lt.s32.totalorder %s4868_s16, %s4868_s16 }
  0x3c   :  { %p4875_p3 = por %p4874_p2, %p4873_p1 }
  0x3e   :  { %p4876_p4 = pnand %p4875_p3, %p4869_p0 }
  0x40   :  { %4879 = shalt.err (!%p4876_p4)
}
  0x41   :  { %102 = dma.hbm_to_vmem [thread:$0]  %s5291_s29, 64, %s100_s10, [#allocation6]  }
  0x42   :  { %s4888_s0 = scalar_lea.vmem %s119_s15, 384  ;;  %p4893_p6 = scmp.lt.s32.totalorder %s119_s15, %s119_s15 }
  0x43   :  { %p4889_p5 = scmp.ne.s32.totalorder %s119_s15, %s4888_s0  ;;  %p4894_p7 = scmp.lt.s32.totalorder %s4888_s0, %s4888_s0 }
  0x45   :  { %p4895_p8 = por %p4894_p7, %p4893_p6 }
  0x47   :  { %p4896_p9 = pnand %p4895_p8, %p4889_p5 }
  0x49   :  { %4899 = shalt.err (!%p4896_p9)
}
  0x4a   :  { %s5229_s18 = smov 128   ;;  %s5230_s22 = smov 8  }
  0x4b   :  { %124 = dma.hbm_to_vmem [thread:$0]  %s5301_s8, 384, %s119_s15, [#allocation9], %s5229_s18, %s5229_s18, %s5230_s22  }
  0x4c   :  { %s5231_s23 = smov [#allocation11]  }
  0x4d   :  { %s144_s26 = sshll.u32 %s5231_s23, 4  ;;  %s145_s26 = int_to_ptr.vmem [resolvable:$true] %s144_s26 }
  0x4e   :  { %s4908_s28 = scalar_lea.vmem %s145_s26, 48  ;;  %s4912_s29 = scalar_lea.vmem %s145_s26, 64 }
  0x4f   :  { %p4909_p10 = scmp.ne.s32.totalorder %s145_s26, %s4908_s28  ;;  %p4913_p11 = scmp.lt.s32.totalorder %s145_s26, %s145_s26 }
  0x50   :  { %p4914_p12 = scmp.lt.s32.totalorder %s4912_s29, %s4908_s28 }
  0x52   :  { %p4915_p13 = por %p4914_p12, %p4913_p11 }
  0x54   :  { %p4916_p0 = pnand %p4915_p13, %p4909_p10 }
  0x56   :  { %4919 = shalt.err (!%p4916_p0)
}
  0x57   :  { %s5232_s1 = smov 16   ;;  %s5233_s2 = smov 1  }
  0x58   :  { %150 = dma.hbm_to_vmem [thread:$0]  %s5321_s30, 48, %s145_s26, [#allocation12], %s5232_s1, %s5232_s1, %s5233_s2  }
  0x59   :  { %s5234_s7 = smov [#allocation14]   ;;  %s5235_s10 = smov [#allocation17]  }
  0x5a   :  { %s168_s8 = sshll.u32 %s5234_s7, 4  ;;  %s192_s11 = sshll.u32 %s5235_s10, 4  ;;  %s169_s8 = int_to_ptr.vmem [resolvable:$true] %s168_s8  ;;  %s193_s11 = int_to_ptr.vmem [resolvable:$true] %s192_s11 }
  0x5b   :  { %s4928_s15 = scalar_lea.vmem %s169_s8, 48  ;;  %s4932_s16 = scalar_lea.vmem %s169_s8, 64 }
  0x5c   :  { %p4929_p1 = scmp.ne.s32.totalorder %s169_s8, %s4928_s15  ;;  %p4933_p2 = scmp.lt.s32.totalorder %s169_s8, %s169_s8 }
  0x5d   :  { %p4934_p3 = scmp.lt.s32.totalorder %s4932_s16, %s4928_s15 }
  0x5f   :  { %p4935_p4 = por %p4934_p3, %p4933_p2 }
  0x61   :  { %p4936_p5 = pnand %p4935_p4, %p4929_p1 }
  0x63   :  { %4939 = shalt.err (!%p4936_p5)
}
  0x64   :  { %174 = dma.hbm_to_vmem [thread:$0]  %s5331_s12, 48, %s169_s8, [#allocation15], %s5232_s1, %s5232_s1, %s5233_s2  }
  0x65   :  { %s4948_s30 = scalar_lea.vmem %s193_s11, 48  ;;  %s4952_s0 = scalar_lea.vmem %s193_s11, 64 }
  0x66   :  { %p4949_p6 = scmp.ne.s32.totalorder %s193_s11, %s4948_s30  ;;  %p4953_p7 = scmp.lt.s32.totalorder %s193_s11, %s193_s11 }
  0x67   :  { %p4954_p8 = scmp.lt.s32.totalorder %s4952_s0, %s4948_s30 }
  0x69   :  { %p4955_p9 = por %p4954_p8, %p4953_p7 }
  0x6b   :  { %p4956_p10 = pnand %p4955_p9, %p4949_p6 }
  0x6d   :  { %4959 = shalt.err (!%p4956_p10)
}
  0x6e   :  { %198 = dma.hbm_to_vmem [thread:$0]  %s5341_s27, 48, %s193_s11, [#allocation18], %s5232_s1, %s5232_s1, %s5233_s2  }
  0x6f   :  { %s5236_s23 = smov [#allocation20]   ;;  %s5237_s28 = smov [#allocation23]  }
  0x70   :  { %s216_s26 = sshll.u32 %s5236_s23, 4  ;;  %s240_s29 = sshll.u32 %s5237_s28, 4  ;;  %s217_s26 = int_to_ptr.vmem [resolvable:$true] %s216_s26  ;;  %s241_s29 = int_to_ptr.vmem [resolvable:$true] %s240_s29 }
  0x71   :  { %s4968_s12 = scalar_lea.vmem %s217_s26, 1536  ;;  %p4973_p12 = scmp.lt.s32.totalorder %s217_s26, %s217_s26 }
  0x72   :  { %p4969_p11 = scmp.ne.s32.totalorder %s217_s26, %s4968_s12  ;;  %p4974_p13 = scmp.lt.s32.totalorder %s4968_s12, %s4968_s12 }
  0x74   :  { %p4975_p0 = por %p4974_p13, %p4973_p12 }
  0x76   :  { %p4976_p1 = pnand %p4975_p0, %p4969_p11 }
  0x78   :  { %4979 = shalt.err (!%p4976_p1)
}
  0x79   :  { %222 = dma.hbm_to_vmem [thread:$0]  %s5351_s13, 1536, %s217_s26, [#allocation21], %s5229_s18, %s5229_s18, %s5230_s22  }
  0x7a   :  { %s4988_s7 = scalar_lea.vmem %s241_s29, 1536  ;;  %p4993_p3 = scmp.lt.s32.totalorder %s241_s29, %s241_s29 }
  0x7b   :  { %p4989_p2 = scmp.ne.s32.totalorder %s241_s29, %s4988_s7  ;;  %p4994_p4 = scmp.lt.s32.totalorder %s4988_s7, %s4988_s7 }
  0x7d   :  { %p4995_p5 = por %p4994_p4, %p4993_p3 }
  0x7f   :  { %p4996_p6 = pnand %p4995_p5, %p4989_p2 }
  0x81   :  { %4999 = shalt.err (!%p4996_p6)
}
  0x82   :  { %246 = dma.hbm_to_vmem [thread:$0]  %s5361_s21, 1536, %s241_s29, [#allocation24], %s5229_s18, %s5229_s18, %s5230_s22  }
  0x83   :  { %s5238_s27 = smov [#allocation2]   ;;  %s5239_s10 = smov [#allocation7]  }
  0x84   :  { %s79_s8 = sshll.u32 %s5238_s27, 4  ;;  %s109_s11 = sshll.u32 %s5239_s10, 4  ;;  %s80_s8 = int_to_ptr.vmem [resolvable:$true] %s79_s8  ;;  %s110_s11 = int_to_ptr.vmem [resolvable:$true] %s109_s11 }
  0x85   :  { %s5008_s15 = scalar_lea.vmem %s80_s8, 128  ;;  %p5013_p8 = scmp.lt.s32.totalorder %s80_s8, %s80_s8 }
  0x86   :  { %p5009_p7 = scmp.ne.s32.totalorder %s80_s8, %s5008_s15  ;;  %p5014_p9 = scmp.lt.s32.totalorder %s5008_s15, %s5008_s15 }
  0x88   :  { %p5015_p10 = por %p5014_p9, %p5013_p8 }
  0x8a   :  { %p5016_p11 = pnand %p5015_p10, %p5009_p7 }
  0x8c   :  { %5019 = shalt.err (!%p5016_p11)
}
  0x8d   :  { %82 = dma.hbm_to_vmem [thread:$0]  %s5261_s5, 128, %s80_s8, [#allocation3]  }
  0x8e   :  { %s5028_s13 = scalar_lea.vmem %s110_s11, 32  ;;  %p5033_p13 = scmp.lt.s32.totalorder %s110_s11, %s110_s11 }
  0x8f   :  { %p5029_p12 = scmp.ne.s32.totalorder %s110_s11, %s5028_s13  ;;  %p5034_p0 = scmp.lt.s32.totalorder %s5028_s13, %s5028_s13 }
  0x91   :  { %p5035_p1 = por %p5034_p0, %p5033_p13 }
  0x93   :  { %p5036_p2 = pnand %p5035_p1, %p5029_p12 }
  0x95   :  { %5039 = shalt.err (!%p5036_p2)
}
  0x96   :  { %112 = dma.hbm_to_vmem [thread:$0]  %s5296_s3, 32, %s110_s11, [#allocation6]  }
  0x97   :  { %s5240_s21 = smov [#allocation10]   ;;  %s5241_s30 = smov [#allocation13]  }
  0x98   :  { %s131_s16 = sshll.u32 %s5240_s21, 4  ;;  %s156_s0 = sshll.u32 %s5241_s30, 4  ;;  %s132_s16 = int_to_ptr.vmem [resolvable:$true] %s131_s16  ;;  %s157_s0 = int_to_ptr.vmem [resolvable:$true] %s156_s0 }
  0x99   :  { %s5048_s23 = scalar_lea.vmem %s132_s16, 16  ;;  %s5052_s26 = scalar_lea.vmem %s132_s16, 32 }
  0x9a   :  { %p5049_p3 = scmp.ne.s32.totalorder %s132_s16, %s5048_s23  ;;  %p5053_p4 = scmp.lt.s32.totalorder %s132_s16, %s132_s16 }
  0x9b   :  { %p5054_p5 = scmp.lt.s32.totalorder %s5052_s26, %s5048_s23 }
  0x9d   :  { %p5055_p6 = por %p5054_p5, %p5053_p4 }
  0x9f   :  { %p5056_p7 = pnand %p5055_p6, %p5049_p3 }
  0xa1   :  { %5059 = shalt.err (!%p5056_p7)
}
  0xa2   :  { %134 = dma.hbm_to_vmem [thread:$0]  %s5306_s14, 16, %s132_s16, [#allocation9]  }
  0xa3   :  { %s5068_s5 = scalar_lea.vmem %s157_s0, 48  ;;  %s5072_s28 = scalar_lea.vmem %s157_s0, 64 }
  0xa4   :  { %p5069_p8 = scmp.ne.s32.totalorder %s157_s0, %s5068_s5  ;;  %p5073_p9 = scmp.lt.s32.totalorder %s157_s0, %s157_s0 }
  0xa5   :  { %p5074_p10 = scmp.lt.s32.totalorder %s5072_s28, %s5068_s5 }
  0xa7   :  { %p5075_p11 = por %p5074_p10, %p5073_p9 }
  0xa9   :  { %p5076_p12 = pnand %p5075_p11, %p5069_p8 }
  0xab   :  { %5079 = shalt.err (!%p5076_p12)
}
  0xac   :  { %162 = dma.hbm_to_vmem [thread:$0]  %s5326_s6, 48, %s157_s0, [#allocation12], %s5232_s1, %s5232_s1, %s5233_s2  }
  0xad   :  { %s5242_s3 = smov [#allocation16]   ;;  %s5243_s12 = smov [#allocation19]  }
  0xae   :  { %s180_s29 = sshll.u32 %s5242_s3, 4  ;;  %s204_s7 = sshll.u32 %s5243_s12, 4  ;;  %s181_s29 = int_to_ptr.vmem [resolvable:$true] %s180_s29  ;;  %s205_s7 = int_to_ptr.vmem [resolvable:$true] %s204_s7 }
  0xaf   :  { %s5088_s14 = scalar_lea.vmem %s181_s29, 1536  ;;  %p5093_p0 = scmp.lt.s32.totalorder %s181_s29, %s181_s29 }
  0xb0   :  { %p5089_p13 = scmp.ne.s32.totalorder %s181_s29, %s5088_s14  ;;  %p5094_p1 = scmp.lt.s32.totalorder %s5088_s14, %s5088_s14 }
  0xb2   :  { %p5095_p2 = por %p5094_p1, %p5093_p0 }
  0xb4   :  { %p5096_p3 = pnand %p5095_p2, %p5089_p13 }
  0xb6   :  { %5099 = shalt.err (!%p5096_p3)
}
  0xb7   :  { %186 = dma.hbm_to_vmem [thread:$0]  %s5336_s20, 1536, %s181_s29, [#allocation15], %s5229_s18, %s5229_s18, %s5230_s22  }
  0xb8   :  { %s5108_s27 = scalar_lea.vmem %s205_s7, 1536  ;;  %p5113_p5 = scmp.lt.s32.totalorder %s205_s7, %s205_s7 }
  0xb9   :  { %p5109_p4 = scmp.ne.s32.totalorder %s205_s7, %s5108_s27  ;;  %p5114_p6 = scmp.lt.s32.totalorder %s5108_s27, %s5108_s27 }
  0xbb   :  { %p5115_p7 = por %p5114_p6, %p5113_p5 }
  0xbd   :  { %p5116_p8 = pnand %p5115_p7, %p5109_p4 }
  0xbf   :  { %5119 = shalt.err (!%p5116_p8)
}
  0xc0   :  { %210 = dma.hbm_to_vmem [thread:$0]  %s5346_s4, 1536, %s205_s7, [#allocation18], %s5229_s18, %s5229_s18, %s5230_s22  }
  0xc1   :  { %s5244_s6 = smov [#allocation22]   ;;  %s5245_s10 = smov [#allocation25]  }
  0xc2   :  { %s228_s8 = sshll.u32 %s5244_s6, 4  ;;  %s254_s11 = sshll.u32 %s5245_s10, 4  ;;  %s229_s8 = int_to_ptr.vmem [resolvable:$true] %s228_s8  ;;  %s255_s11 = int_to_ptr.vmem [resolvable:$true] %s254_s11 }
  0xc3   :  { %s5128_s15 = scalar_lea.vmem %s229_s8, 48  ;;  %s5132_s20 = scalar_lea.vmem %s229_s8, 64 }
  0xc4   :  { %p5129_p9 = scmp.ne.s32.totalorder %s229_s8, %s5128_s15  ;;  %p5133_p10 = scmp.lt.s32.totalorder %s229_s8, %s229_s8 }
  0xc5   :  { %p5134_p11 = scmp.lt.s32.totalorder %s5132_s20, %s5128_s15 }
  0xc7   :  { %p5135_p12 = por %p5134_p11, %p5133_p10 }
  0xc9   :  { %p5136_p13 = pnand %p5135_p12, %p5129_p9 }
  0xcb   :  { %5139 = shalt.err (!%p5136_p13)
}
  0xcc   :  { %234 = dma.hbm_to_vmem [thread:$0]  %s5356_s17, 48, %s229_s8, [#allocation21], %s5232_s1, %s5232_s1, %s5233_s2  }
  0xcd   :  { %s5148_s4 = scalar_lea.vmem %s255_s11, 1536  ;;  %p5153_p1 = scmp.lt.s32.totalorder %s255_s11, %s255_s11 }
  0xce   :  { %p5149_p0 = scmp.ne.s32.totalorder %s255_s11, %s5148_s4  ;;  %p5154_p2 = scmp.lt.s32.totalorder %s5148_s4, %s5148_s4 }
  0xd0   :  { %p5155_p3 = por %p5154_p2, %p5153_p1 }
  0xd2   :  { %p5156_p4 = pnand %p5155_p3, %p5149_p0 }
  0xd4   :  { %5159 = shalt.err (!%p5156_p4)
}
  0xd5   :  { %s5878_s13 = sld [smem:[#allocation44_spill]] }
  0xdb   :  { %260 = dma.hbm_to_vmem [thread:$0]  %s5878_s13, 1536, %s255_s11, [#allocation24], %s5229_s18, %s5229_s18, %s5230_s22  }
  0xdc   :  { %5180 = dma.done.wait [#allocation3], 128  }
  0xdd   :  { %5181 = vsyncadd [#allocation3], 4294967168 }
  0xde   :  { %5182 = dma.done.wait [#allocation6], 96  }
  0xdf   :  { %5183 = vsyncadd [#allocation6], 4294967200 }
  0xe0   :  { %5184 = dma.done.wait [#allocation9], 400  }
  0xe1   :  { %5185 = vsyncadd [#allocation9], 4294966896 }
  0xe2   :  { %5186 = dma.done.wait [#allocation12], 96  }
  0xe3   :  { %5187 = vsyncadd [#allocation12], 4294967200 }
  0xe4   :  { %5188 = dma.done.wait [#allocation15], 1584  }
  0xe5   :  { %5189 = vsyncadd [#allocation15], 4294965712 }
  0xe6   :  { %5190 = dma.done.wait [#allocation18], 1584  }
  0xe7   :  { %5191 = vsyncadd [#allocation18], 4294965712 }
  0xe8   :  { %5192 = dma.done.wait [#allocation21], 1584  }
  0xe9   :  { %5193 = vsyncadd [#allocation21], 4294965712 }
  0xea   :  { %5194 = dma.done.wait [#allocation24], 3072  }
  0xeb   :  { %5195 = vsyncadd [#allocation24], 4294964224  ;;  %v5246_v0 = vmov 0.0   ;;  %vm5247_vm0 = vmmov 0   ;;  %v5248_v1 = vmov 1.0   ;;  %vm334_vm1 = vcmask 130048  }
  0xec   :  { %4349 = vmatprep.subr.mxu1 %v5246_v0  ;;  %4353 = vmatprep.mubr.msk.f32.mxu1 %vm5247_vm0, %v5246_v0  ;;  %v330_v2 = vld [vmem:[#allocation5] sm:$0xf]  ;;  %v414_v4 = vld [vmem:[#allocation8 + $0x10] sm:$0xf]  ;;  %s5879_s17 = sld [smem:[#allocation41_spill]]  ;;  %vm426_vm2 = vcmask 1043456  }
  0xed   :  { %4350 = vmatpush3.msra.mxu1 %v5248_v1  ;;  %4365 = vmatprep.subr.mxu0 %v5246_v0  ;;  %v5464_v3 = vunpack.c.l.bf16 %v330_v2  ;;  %s5880_s18 = sld [smem:[#allocation42_spill]]  ;;  %v413_v5 = vld [vmem:[#allocation8 + $0x8] sm:$0xff]  ;;  %v412_v6 = vld [vmem:[#allocation8] sm:$0xff]  ;;  %v411_v7 = vld [vmem:[#allocation2] sm:$0xff]  ;;  %vm422_vm3 = vcmask 162816   ;;  %vm505_vm4 = vcmask 261120  }
  0xee   :  { %4351 = vmatprep.subr.mxu1 %v5246_v0  ;;  %4373 = vmatprep.mubr.msk.f32.mxu0 %vm5247_vm0, %v5246_v0  ;;  %s5881_s22 = sld [smem:[#allocation36_spill]]  ;;  %v4045_v20 = vld [vmem:[#allocation10] ss:$0 sm:$0xff]  ;;  %vm653_vm5 = vcmask 64512   ;;  %v5249_v31 = vmov 0   ;;  %vm737_vm6 = vcmask 23552  }
  0xef   :  { %4352 = vmatpush3.msra.mxu1 %v5248_v1  ;;  %s5882_s1 = sld [smem:[#allocation40_spill]]  ;;  %4772 = vset.pattern.permute.xlu1 %v5249_v31  ;;  %v964_v45 = vld [vmem:[#allocation16 + $0x18] sm:$0xff]  ;;  %v963_v46 = vld [vmem:[#allocation16 + $0x10] sm:$0xff]  ;;  %v962_v47 = vld [vmem:[#allocation16 + $0x8] sm:$0xff]  ;;  %s5250_s23 = smov 32   ;;  %vm3917_vm7 = vcmask 1041409  }
  0xf0   :  { %4356 = vmatprep.subr.mxu1 %v5246_v0  ;;  %4354 = vmatmul.mubr.msk.f32.vlgmr.msra.gmra.mxu1 %vm334_vm1, %v5464_v3  ;;  %s5883_s2 = sld [smem:[#allocation39_spill]]  ;;  %v961_v48 = vld [vmem:[#allocation16] sm:$0xff]  ;;  %v4056_v51 = vld [vmem:[#allocation11] ss:$0 sm:$0xff]  ;;  %v4057_v52 = vld [vmem:[#allocation13] ss:$0 sm:$0xff] }
  0xf1   :  { %4357 = vmatpush3.msk.msra.mxu1 %vm426_vm2, %v414_v4  ;;  %4362 = vmatprep.mubr.msk.f32.mxu1 %vm5247_vm0, %v5246_v0  ;;  %s5884_s21 = sld [smem:[#allocation38_spill]]  ;;  %v4058_v2 = vld [vmem:[#allocation14] ss:$0 sm:$0xff]  ;;  %s5251_s26 = smov 96   ;;  %vm3991_vm8 = vcmask 58368  }
  0xf2   :  { %4358 = vmatprep.subr.mxu1 %v5246_v0  ;;  %v504_v8 = vld [vmem:[%s5879_s17 + $0x18] sm:$0xff]  ;;  %v503_v10 = vld [vmem:[%s5879_s17 + $0x10] sm:$0xff]  ;;  %v502_v12 = vld [vmem:[%s5879_s17 + $0x8] sm:$0xff]  ;;  %s5885_s16 = sld [smem:[#allocation37_spill]]  ;;  %4773 = vset.pattern.permute.xlu0 %v5249_v31 }
  0xf3   :  { %4359 = vmatpush3.msra.mxu1 %v413_v5  ;;  %v582_v9 = vld [vmem:[%s5880_s18 + $0x18] sm:$0xff]  ;;  %4366 = vmatpush3.msra.mxu0 %v504_v8  ;;  %v581_v11 = vld [vmem:[%s5880_s18 + $0x10] sm:$0xff]  ;;  %v580_v13 = vld [vmem:[%s5880_s18 + $0x8] sm:$0xff]  ;;  %s5886_s30 = sld [smem:[#allocation46_spill]] }
  0xf4   :  { %4360 = vmatprep.subr.mxu1 %v5246_v0  ;;  %4367 = vmatprep.subr.mxu0 %v5246_v0  ;;  %v501_v14 = vld [vmem:[%s5879_s17] sm:$0xff]  ;;  %s5887_s0 = sld [smem:[#allocation45_spill]] }
  0xf5   :  { %4361 = vmatpush3.msra.mxu1 %v412_v6  ;;  %4368 = vmatpush3.msra.mxu0 %v503_v10  ;;  %v579_v15 = vld [vmem:[%s5880_s18] sm:$0xff]  ;;  %s5888_s5 = sld [smem:[#allocation43_spill]] }
  0xf6   :  { %4363 = vmatmul.mubr.msk.f32.vlgmr.msra.gmra.mxu1 %vm422_vm3, %v411_v7  ;;  %4376 = vmatprep.subr.mxu1 %v5246_v0  ;;  %v5490_v16 = vld [vmem:[%s5881_s22] sm:$0xff]  ;;  %s5889_s28 = sld [smem:[#allocation47_spill]] }
  0xf7   :  { %4384 = vmatprep.mubr.msk.f32.mxu1 %vm5247_vm0, %v5246_v0  ;;  %4377 = vmatpush3.msra.mxu1 %v582_v9  ;;  %v4164_v19 = vld [vmem:[%s5882_s1] sm:$0xff]  }
  0xf8   :  { %4378 = vmatprep.subr.mxu1 %v5246_v0  ;;  %4369 = vmatprep.subr.mxu0 %v5246_v0  ;;  %v5496_v22 = vunpack.c.l.bf16 %v4164_v19  ;;  %v5504_v25 = vunpack.c.h.bf16 %v4164_v19  ;;  %v4160_v26 = vld [vmem:[%s5883_s2] sm:$0xff]   ;;  %v333_v32 = vld [vmem:[%s5885_s16 + $0x8] sm:$0xff] }
  0xf9   :  { %4379 = vmatpush3.msra.mxu1 %v581_v11  ;;  %4370 = vmatpush3.msra.mxu0 %v502_v12  ;;  %v4156_v27 = vld [vmem:[%s5884_s21] sm:$0xff]   ;;  %v5513_v28 = vunpack.c.l.bf16 %v4160_v26  ;;  %v5523_v33 = vunpack.c.h.bf16 %v4160_v26 }
  0xfa   :  { %4380 = vmatprep.subr.mxu1 %v5246_v0  ;;  %4371 = vmatprep.subr.mxu0 %v5246_v0  ;;  %v5515_v29 = vunpack.c.l.bf16 %v4156_v27  ;;  %v332_v30 = vld [vmem:[%s5885_s16] sm:$0xff]  ;;  %v5525_v34 = vunpack.c.h.bf16 %v4156_v27  ;;  %v1070_v27 = vld [vmem:[#allocation25 + $0x18] sm:$0xff] }
  0xfb   :  { %4381 = vmatpush3.msra.mxu1 %v580_v13  ;;  %4372 = vmatpush3.msra.mxu0 %v501_v14  ;;  %v1068_v31 = vld [vmem:[#allocation25 + $0x8] sm:$0xff] }
  0xfc   :  { %4382 = vmatprep.subr.mxu1 %v5246_v0  ;;  %4387 = vmatprep.subr.mxu0 %v5490_v16 }
  0xfd   :  { %4383 = vmatpush3.msra.mxu1 %v579_v15  ;;  %920 = vperm.xlu1 %4772, %v332_v30   ;;  %v1069_v30 = vld [vmem:[#allocation25 + $0x10] sm:$0xff] }
 0x101   :  { %925 = vperm.xlu1 %4772, %v333_v32   ;;  %v1067_v32 = vld [vmem:[#allocation25] sm:$0xff] }
 0x178   :  { %v5541_v50 = vpop.permute.xlu1 %920 }
 0x179   :  { %v934_v4 = vmul.f32 %v4057_v52, %v5541_v50 }
 0x17c   :  { %v5543_v54 = vpop.permute.xlu1 %925 }
 0x17d   :  { %v935_v59 = vmul.f32 %v4057_v52, %v5543_v54 }
 0x1b0   :  { %v5493_v17 = vpop.f32.mrf.mxu1 }
 0x1b2   :  { %v4355_v18 = vpop.f32.mrf.mxu1 }
 0x1b6   :  { %v496_v21 = vpop.f32.mrf.mxu1 }
 0x1b7   :  { %v5498_v23 = vadd.f32 %v4045_v20, %v496_v21 }
 0x1b8   :  { %v4364_v24 = vpop.f32.mrf.mxu1 }
 0x1b9   :  { %4374 = vmatmul.mubr.msk.f32.vlgmr.msra.gmra.mxu0 %vm505_vm4, %v5498_v23  ;;  %4385 = vmatmul.mubr.msk.f32.vlgmr.msra.gmra.mxu1 %vm505_vm4, %v5498_v23 }
 0x1ba   :  { %4388 = vmatpush3.msra.mxu0 %v5490_v16  ;;  %4389 = vmatprep.mubr.msk.f32.mxu0 %vm653_vm5, %v5496_v22 }
 0x1bb   :  { %4394 = vmatprep.mubr.msk.f32.mxu1 %vm653_vm5, %v5513_v28 }
 0x1bd   :  { %4390 = vmatmul.mubr.msk.f32.vlgmr.msra.gmra.mxu0 %vm653_vm5, %v5504_v25 }
 0x1be   :  { %4399 = vmatprep.mubr.msk.f32.mxu0 %vm653_vm5, %v5515_v29 }
 0x279   :  { %v575_v35 = vpop.f32.mrf.mxu0  ;;  %v649_v36 = vpop.f32.mrf.mxu1 }
 0x27a   :  { %4392 = vmatprep.subr.mxu1 %v649_v36  ;;  %4397 = vmatprep.subr.mxu0 %v575_v35 }
 0x27b   :  { %v4375_v37 = vpop.f32.mrf.mxu0  ;;  %v4386_v38 = vpop.f32.mrf.mxu1  ;;  %4393 = vmatpush3.msra.mxu1 %v649_v36  ;;  %4398 = vmatpush3.msra.mxu0 %v575_v35  ;;  %v4059_v35 = vld [vmem:[#allocation17] ss:$0 sm:$0xff] }
 0x27c   :  { %4395 = vmatmul.mubr.msk.f32.vlgmr.msra.gmra.mxu1 %vm653_vm5, %v5523_v33  ;;  %4400 = vmatmul.mubr.msk.f32.vlgmr.msra.gmra.mxu0 %vm653_vm5, %v5525_v34 }
 0x27d   :  { %v5531_v39 = vpop.f32.mrf.mxu0  ;;  %4402 = vmatprep.subr.mxu1 %v964_v45  ;;  %4413 = vmatprep.subr.mxu0 %v1070_v27 }
 0x27e   :  { %v736_v41 = vmul.f32 %v5531_v39, %v5531_v39  ;;  %4403 = vmatpush3.msra.mxu1 %v964_v45  ;;  %4414 = vmatpush3.msra.mxu0 %v1070_v27 }
 0x27f   :  { %v5533_v40 = vpop.f32.mrf.mxu0  ;;  %4404 = vmatprep.subr.mxu1 %v963_v46  ;;  %4415 = vmatprep.subr.mxu0 %v1069_v30 }
 0x280   :  { %v735_v42 = vmul.f32 %v5533_v40, %v5533_v40  ;;  %v741_v44 = vsel %vm737_vm6, %v736_v41, 0.0  ;;  %4405 = vmatpush3.msra.mxu1 %v963_v46  ;;  %4416 = vmatpush3.msra.mxu0 %v1069_v30  ;;  %v408_v30 = vmax.f32 %v5493_v17, 1.0 }
 0x281   :  { %4406 = vmatprep.subr.mxu1 %v962_v47  ;;  %4417 = vmatprep.subr.mxu0 %v1068_v31 }
 0x282   :  { %v738_v43 = vsel %vm737_vm6, %v735_v42, 0.0  ;;  %4407 = vmatpush3.msra.mxu1 %v962_v47  ;;  %4418 = vmatpush3.msra.mxu0 %v1068_v31 }
 0x283   :  { %739 = vadd.xlane.f32.xlu0 %v738_v43  ;;  %4408 = vmatprep.subr.mxu1 %v961_v48 }
 0x284   :  { %4409 = vmatpush3.msra.mxu1 %v961_v48  ;;  %4419 = vmatprep.subr.mxu0 %v1067_v32 }
 0x285   :  { %4420 = vmatpush3.msra.mxu0 %v1067_v32 }
 0x286   :  { %4435 = vmatprep.subr.mxu0 %v5246_v0 }
 0x287   :  { %742 = vadd.xlane.f32.xlu0 %v741_v44 }
 0x30c   :  { %v740_v49 = vpop.xlane.xlu0 %739 }
 0x30d   :  { %v913_v62 = vmul.f32 %v4056_v51, %v740_v49 }
 0x310   :  { %v743_v53 = vpop.xlane.xlu0 %742 }
 0x311   :  { %v914_v57 = vmul.f32 %v4056_v51, %v743_v53 }
 0x33c   :  { %v4396_v55 = vpop.f32.mrf.mxu1  ;;  %v4401_v56 = vpop.f32.mrf.mxu0 }
 0x33d   :  { %v903_v58 = vadd.f32 %v4401_v56, %v4396_v55  ;;  %v1176_v56 = vld [vmem:[%s5886_s30 + $0x18] sm:$0xff] }
 0x33e   :  { %v816_v60 = vpop.f32.mrf.mxu1  ;;  %v897_v61 = vpop.f32.mrf.mxu0  ;;  %4424 = vmatprep.subr.mxu1 %v1176_v56 }
 0x33f   :  { %v916_v63 = vadd.f32 %v914_v57, %v903_v58  ;;  %v898_v1 = vadd.f32 %v897_v61, %v816_v60  ;;  %v1175_v57 = vld [vmem:[%s5886_s30 + $0x10] sm:$0xff]  ;;  %v1174_v58 = vld [vmem:[%s5886_s30 + $0x8] sm:$0xff]  ;;  %v4062_v60 = vld [vmem:[%s5887_s0] ss:$0 sm:$0xff] }
 0x341   :  { %v937_v5 = vadd.f32 %v935_v59, %v916_v63  ;;  %v915_v6 = vadd.f32 %v913_v62, %v898_v1  ;;  %v1173_v59 = vld [vmem:[%s5886_s30] sm:$0xff] }
 0x343   :  { %v946_v7 = vadd.f32 %v4058_v2, %v937_v5  ;;  %v936_v8 = vadd.f32 %v934_v4, %v915_v6 }
 0x345   :  { %v948_v9 = vsub.f32 0.0, %v946_v7  ;;  %v945_v10 = vadd.f32 %v4058_v2, %v936_v8 }
 0x347   :  { %v951_v11 = vmul.f32 1.442695, %v948_v9  ;;  %v947_v12 = vsub.f32 0.0, %v945_v10 }
 0x349   :  { %4774 = vpow2.f32 %v951_v11  ;;  %v949_v13 = vmul.f32 1.442695, %v947_v12 }
 0x34b   :  { %4776 = vpow2.f32 %v949_v13 }
 0x356   :  { %v4775_v14 = vpop.eup %4774 }
 0x357   :  { %v954_v15 = vadd.f32 1.0, %v4775_v14 }
 0x358   :  { %v4777_v18 = vpop.eup %4776 }
 0x359   :  { %v953_v19 = vadd.f32 1.0, %v4777_v18  ;;  %4778 = vrcp.f32 %v954_v15  ;;  %v1364_v15 = vld [vmem:[#allocation19 + $0x18] sm:$0xff]  ;;  %v1363_v18 = vld [vmem:[#allocation19 + $0x10] sm:$0xff] }
 0x35b   :  { %4780 = vrcp.f32 %v953_v19  ;;  %v1362_v19 = vld [vmem:[#allocation19 + $0x8] sm:$0xff] }
 0x366   :  { %v4779_v20 = vpop.eup %4778 }
 0x367   :  { %v960_v26 = vmul.f32 %v4779_v20, %v946_v7  ;;  %v1361_v20 = vld [vmem:[#allocation19] sm:$0xff] }
 0x368   :  { %v4781_v21 = vpop.eup %4780 }
 0x369   :  { %v959_v24 = vmul.f32 %v4781_v21, %v945_v10 }
 0x36b   :  { %4410 = vmatprep.mubr.msk.f32.mxu1 %vm505_vm4, %v959_v24 }
 0x36c   :  { %4411 = vmatmul.mubr.msk.f32.vlgmr.msra.gmra.mxu1 %vm505_vm4, %v960_v26 }
 0x36d   :  { %4425 = vmatpush3.msra.mxu1 %v1176_v56  ;;  %v1529_v56 = vld [vmem:[#allocation23 + $0x10] sm:$0xff] }
 0x36e   :  { %4426 = vmatprep.subr.mxu1 %v1175_v57 }
 0x36f   :  { %4427 = vmatpush3.msra.mxu1 %v1175_v57  ;;  %v1528_v57 = vld [vmem:[#allocation23 + $0x8] sm:$0xff] }
 0x370   :  { %4428 = vmatprep.subr.mxu1 %v1174_v58 }
 0x371   :  { %4429 = vmatpush3.msra.mxu1 %v1174_v58  ;;  %v1527_v58 = vld [vmem:[#allocation23] sm:$0xff] }
 0x372   :  { %4430 = vmatprep.subr.mxu1 %v1173_v59 }
 0x373   :  { %4431 = vmatpush3.msra.mxu1 %v1173_v59 }
 0x374   :  { %4453 = vmatprep.subr.mxu1 %v5246_v0 }
 0x42c   :  { %v4412_v36 = vpop.f32.mrf.mxu1 }
 0x42d   :  { %v1050_v37 = vadd.f32 %v4412_v36, %v4059_v35 }
 0x42e   :  { %v1044_v38 = vpop.f32.mrf.mxu1 }
 0x42f   :  { %v1054_v41 = vsub.f32 0.0, %v1050_v37  ;;  %v1045_v42 = vadd.f32 %v4059_v35, %v1044_v38 }
 0x431   :  { %v1057_v43 = vmul.f32 1.442695, %v1054_v41  ;;  %v1053_v44 = vsub.f32 0.0, %v1045_v42 }
 0x433   :  { %4782 = vpow2.f32 %v1057_v43  ;;  %v1055_v45 = vmul.f32 1.442695, %v1053_v44  ;;  %v1366_v43 = vld [vmem:[#allocation20 + $0x8] sm:$0xff]  ;;  %v1365_v44 = vld [vmem:[#allocation20] sm:$0xff] }
 0x435   :  { %4784 = vpow2.f32 %v1055_v45  ;;  %v4076_v45 = vld [vmem:[%s5879_s17 + $0x38] sm:$0xff] }
 0x440   :  { %v4783_v46 = vpop.eup %4782 }
 0x441   :  { %v1060_v47 = vadd.f32 1.0, %v4783_v46  ;;  %v4075_v46 = vld [vmem:[%s5879_s17 + $0x30] sm:$0xff] }
 0x442   :  { %v4785_v48 = vpop.eup %4784 }
 0x443   :  { %v1059_v49 = vadd.f32 1.0, %v4785_v48  ;;  %4786 = vrcp.f32 %v1060_v47  ;;  %v4074_v47 = vld [vmem:[%s5879_s17 + $0x28] sm:$0xff]  ;;  %v4073_v48 = vld [vmem:[%s5879_s17 + $0x20] sm:$0xff] }
 0x445   :  { %4788 = vrcp.f32 %v1059_v49 }
 0x450   :  { %v4787_v51 = vpop.eup %4786 }
 0x451   :  { %v5552_v55 = vmul.f32 %v4787_v51, %v1050_v37 }
 0x452   :  { %v4789_v52 = vpop.eup %4788 }
 0x453   :  { %v5550_v53 = vmul.f32 %v4789_v52, %v1045_v42  ;;  %v1368_v42 = vld [vmem:[#allocation20 + $0x18] sm:$0xff] }
 0x455   :  { %4421 = vmatprep.mubr.msk.f32.mxu0 %vm505_vm4, %v5550_v53 }
 0x456   :  { %4422 = vmatmul.mubr.msk.f32.vlgmr.msra.gmra.mxu0 %vm505_vm4, %v5552_v55 }
 0x457   :  { %4439 = vmatprep.mubr.msk.f32.mxu0 %vm5247_vm0, %v5246_v0 }
 0x516   :  { %v4423_v61 = vpop.f32.mrf.mxu0 }
 0x517   :  { %v1156_v62 = vadd.f32 %v4423_v61, %v4062_v60 }
 0x518   :  { %v1150_v63 = vpop.f32.mrf.mxu0 }
 0x519   :  { %v1160_v1 = vsub.f32 0.0, %v1156_v62  ;;  %v1151_v2 = vadd.f32 %v4062_v60, %v1150_v63 }
 0x51b   :  { %v1163_v4 = vmul.f32 1.442695, %v1160_v1  ;;  %v1159_v5 = vsub.f32 0.0, %v1151_v2 }
 0x51d   :  { %4790 = vpow2.f32 %v1163_v4  ;;  %v1161_v6 = vmul.f32 1.442695, %v1159_v5 }
 0x51f   :  { %4792 = vpow2.f32 %v1161_v6 }
 0x52a   :  { %v4791_v7 = vpop.eup %4790 }
 0x52b   :  { %v1166_v8 = vadd.f32 1.0, %v4791_v7 }
 0x52c   :  { %v4793_v9 = vpop.eup %4792 }
 0x52d   :  { %v1165_v10 = vadd.f32 1.0, %v4793_v9  ;;  %4794 = vrcp.f32 %v1166_v8  ;;  %v4081_v9 = vld [vmem:[%s5880_s18 + $0x38] sm:$0xff] }
 0x52f   :  { %4796 = vrcp.f32 %v1165_v10  ;;  %v4080_v10 = vld [vmem:[%s5880_s18 + $0x30] sm:$0xff] }
 0x530   :  { %4798 = vrcp.f32 %v408_v30 }
 0x53a   :  { %v4795_v11 = vpop.eup %4794 }
 0x53b   :  { %v1172_v14 = vmul.f32 %v4795_v11, %v1156_v62  ;;  %v4070_v62 = vld [vmem:[#allocation22] ss:$0 sm:$0xff]  ;;  %v4079_v11 = vld [vmem:[%s5880_s18 + $0x28] sm:$0xff] }
 0x53c   :  { %v4797_v12 = vpop.eup %4796 }
 0x53d   :  { %v1171_v13 = vmul.f32 %v4797_v12, %v1151_v2  ;;  %v4799_v37 = vpop.eup %4798  ;;  %v4078_v12 = vld [vmem:[%s5880_s18 + $0x20] sm:$0xff] }
 0x53f   :  { %4432 = vmatprep.mubr.msk.f32.mxu1 %vm505_vm4, %v1171_v13 }
 0x540   :  { %4433 = vmatmul.mubr.msk.f32.vlgmr.msra.gmra.mxu1 %vm505_vm4, %v1172_v14  ;;  %v4072_v14 = vld [vmem:[%s5888_s5] ss:$0 sm:$0xff] }
 0x541   :  { %4454 = vmatpush3.msra.mxu1 %v1364_v15  ;;  %4461 = vmatprep.mubr.msk.f32.mxu1 %vm5247_vm0, %v5246_v0 }
 0x542   :  { %4455 = vmatprep.subr.mxu1 %v5246_v0 }
 0x543   :  { %4456 = vmatpush3.msra.mxu1 %v1363_v18 }
 0x544   :  { %4457 = vmatprep.subr.mxu1 %v5246_v0 }
 0x545   :  { %4458 = vmatpush3.msra.mxu1 %v1362_v19 }
 0x546   :  { %4459 = vmatprep.subr.mxu1 %v5246_v0 }
 0x547   :  { %4460 = vmatpush3.msra.mxu1 %v1361_v20 }
 0x548   :  { %4462 = vmatmul.mubr.msk.f32.vlgmr.msra.gmra.mxu1 %vm505_vm4, %v5498_v23  ;;  %4475 = vmatprep.subr.mxu1 %v5246_v0 }
 0x549   :  { %4483 = vmatprep.mubr.msk.f32.mxu1 %vm5247_vm0, %v5246_v0  ;;  %4476 = vmatpush3.msra.mxu1 %v4076_v45 }
 0x54a   :  { %4477 = vmatprep.subr.mxu1 %v5246_v0 }
 0x54b   :  { %4478 = vmatpush3.msra.mxu1 %v4075_v46 }
 0x54c   :  { %4479 = vmatprep.subr.mxu1 %v5246_v0 }
 0x54d   :  { %4480 = vmatpush3.msra.mxu1 %v4074_v47 }
 0x54e   :  { %4481 = vmatprep.subr.mxu1 %v5246_v0 }
 0x54f   :  { %4482 = vmatpush3.msra.mxu1 %v4073_v48 }
 0x600   :  { %v4434_v21 = vpop.f32.mrf.mxu1 }
 0x601   :  { %1265 = vperm.xlu0 %4773, %v4434_v21  }
 0x602   :  { %v1249_v24 = vpop.f32.mrf.mxu1 }
 0x603   :  { %1260 = vperm.xlu1 %4772, %v1249_v24  }
 0x608   :  { %v5578_v26 = vpop.f32.mrf.mxu1 }
 0x60a   :  { %v4463_v27 = vpop.f32.mrf.mxu1 }
 0x67c   :  { %v1266_v31 = vpop.permute.xlu0 %1265 }
 0x67d   :  { %v1269_v32 = vmul.f32 %v5531_v39, %v1266_v31 }
 0x67e   :  { %v1261_v35 = vpop.permute.xlu1 %1260 }
 0x67f   :  { %1274 = vrot.lane.b32.xlu1 %v1269_v32, %s5250_s23  ;;  %v1268_v36 = vmul.f32 %v1261_v35, %v5533_v40  ;;  %v1367_v40 = vld [vmem:[#allocation20 + $0x10] sm:$0xff] }
 0x683   :  { %1272 = vrot.lane.b32.xlu1 %v1268_v36, %s5250_s23  ;;  %v2051_v36 = vld [vmem:[#allocation16 + $0x38] sm:$0xff] }
 0x687   :  { %1352 = vperm.xlu1 %4772, %v4799_v37   ;;  %v2050_v37 = vld [vmem:[#allocation16 + $0x30] sm:$0xff] }
 0x6f1   :  { %v1275_v38 = vpop.permute.xlu1 %1274 }
 0x6f2   :  { %v1279_v41 = vsel %vm505_vm4, %v5552_v55, %v1275_v38  ;;  %v1530_v55 = vld [vmem:[#allocation23 + $0x18] sm:$0xff]  ;;  %v2049_v38 = vld [vmem:[#allocation16 + $0x28] sm:$0xff] }
 0x6f3   :  { %4436 = vmatpush3.msra.mxu0 %v1279_v41  ;;  %v2048_v41 = vld [vmem:[#allocation16 + $0x20] sm:$0xff] }
 0x6f4   :  { %4437 = vmatprep.subr.mxu0 %v5246_v0 }
 0x6f5   :  { %v1273_v17 = vpop.permute.xlu1 %1272 }
 0x6f6   :  { %v1278_v39 = vsel %vm505_vm4, %v5550_v53, %v1273_v17  ;;  %v4089_v17 = vld [vmem:[#allocation11 + $0x1] ss:$0 sm:$0xff] }
 0x6f7   :  { %4438 = vmatpush3.msra.mxu0 %v1278_v39 }
 0x6f8   :  { %4440 = vmatmul.mubr.msk.f32.vlgmr.msra.gmra.mxu0 %vm334_vm1, %v5464_v3  ;;  %4442 = vmatprep.subr.mxu0 %v5246_v0 }
 0x6f9   :  { %4443 = vmatpush3.msra.mxu0 %v1368_v42  ;;  %4450 = vmatprep.mubr.msk.f32.mxu0 %vm5247_vm0, %v5246_v0 }
 0x6fa   :  { %4444 = vmatprep.subr.mxu0 %v5246_v0 }
 0x6fb   :  { %4445 = vmatpush3.msra.mxu0 %v1367_v40 }
 0x6fc   :  { %4446 = vmatprep.subr.mxu0 %v5246_v0 }
 0x6fd   :  { %4447 = vmatpush3.msra.mxu0 %v1366_v43  ;;  %v4090_v43 = vld [vmem:[#allocation13 + $0x1] ss:$0 sm:$0xff] }
 0x6fe   :  { %4448 = vmatprep.subr.mxu0 %v5246_v0 }
 0x6ff   :  { %4449 = vmatpush3.msra.mxu0 %v1365_v44 }
 0x700   :  { %4464 = vmatprep.subr.mxu0 %v5246_v0 }
 0x702   :  { %v5606_v49 = vpop.permute.xlu1 %1352 }
 0x7b8   :  { %v1346_v51 = vpop.f32.mrf.mxu0 }
 0x7b9   :  { %v1355_v52 = vmul.f32 %v5606_v49, %v1346_v51  ;;  %4451 = vmatmul.mubr.msk.f32.vlgmr.msra.gmra.mxu0 %vm505_vm4, %v1346_v51  ;;  %v2020_v51 = vmul.f32 %v4090_v43, %v5543_v54 }
 0x7ba   :  { %v4441_v53 = vpop.f32.mrf.mxu0  ;;  %4472 = vmatprep.mubr.msk.f32.mxu0 %vm5247_vm0, %v5246_v0  ;;  %4465 = vmatpush3.msra.mxu0 %v1530_v55 }
 0x7bb   :  { %1357 = vrot.lane.b32.xlu1 %v1355_v52, %s5251_s26  ;;  %4466 = vmatprep.subr.mxu0 %v5246_v0 }
 0x7bc   :  { %4467 = vmatpush3.msra.mxu0 %v1529_v56  ;;  %v4091_v56 = vld [vmem:[#allocation14 + $0x1] ss:$0 sm:$0xff] }
 0x7bd   :  { %4468 = vmatprep.subr.mxu0 %v5246_v0 }
 0x7be   :  { %4469 = vmatpush3.msra.mxu0 %v1528_v57  ;;  %v2019_v57 = vmul.f32 %v4090_v43, %v5541_v50 }
 0x7bf   :  { %4470 = vmatprep.subr.mxu0 %v5246_v0 }
 0x7c0   :  { %4471 = vmatpush3.msra.mxu0 %v1527_v58 }
 0x7c1   :  { %4486 = vmatprep.subr.mxu0 %v5246_v0 }
 0x82d   :  { %v1358_v59 = vpop.permute.xlu1 %1357 }
 0x82e   :  { %v5618_v60 = vadd.f32 %v1358_v59, %v5490_v16 }
 0x830   :  { %4497 = vmatprep.subr.mxu1 %v5618_v60 }
 0x879   :  { %v1438_v61 = vpop.f32.mrf.mxu0 }
 0x87a   :  { %v1509_v63 = vadd.f32 %v5578_v26, %v1438_v61 }
 0x87b   :  { %v4452_v1 = vpop.f32.mrf.mxu0 }
 0x87c   :  { %v1519_v2 = vadd.f32 %v4070_v62, %v1509_v63 }
 0x87e   :  { %v1520_v4 = vsub.f32 0.0, %v1519_v2 }
 0x880   :  { %v1521_v5 = vmul.f32 1.442695, %v1520_v4 }
 0x882   :  { %4800 = vpow2.f32 %v1521_v5 }
 0x88f   :  { %v4801_v6 = vpop.eup %4800 }
 0x890   :  { %v1523_v7 = vadd.f32 1.0, %v4801_v6 }
 0x892   :  { %4802 = vrcp.f32 %v1523_v7 }
 0x89f   :  { %v4803_v8 = vpop.eup %4802 }
 0x8a0   :  { %v1526_v16 = vmul.f32 %v4803_v8, %v1519_v2 }
 0x8a2   :  { %4473 = vmatmul.mubr.msk.f32.vlgmr.msra.gmra.mxu0 %vm505_vm4, %v1526_v16 }
 0x8a3   :  { %4487 = vmatpush3.msra.mxu0 %v4081_v9  ;;  %4494 = vmatprep.mubr.msk.f32.mxu0 %vm5247_vm0, %v5246_v0 }
 0x8a4   :  { %4488 = vmatprep.subr.mxu0 %v5246_v0 }
 0x8a5   :  { %4489 = vmatpush3.msra.mxu0 %v4080_v10 }
 0x8a6   :  { %4490 = vmatprep.subr.mxu0 %v5246_v0 }
 0x8a7   :  { %4491 = vmatpush3.msra.mxu0 %v4079_v11 }
 0x8a8   :  { %4492 = vmatprep.subr.mxu0 %v5246_v0 }
 0x8a9   :  { %4493 = vmatpush3.msra.mxu0 %v4078_v12 }
 0x962   :  { %v1600_v13 = vpop.f32.mrf.mxu0 }
 0x963   :  { %v1604_v15 = vadd.f32 %v1600_v13, %v5498_v23  ;;  %v2159_v13 = vld [vmem:[#allocation25 + $0x38] sm:$0xff] }
 0x964   :  { %v4474_v18 = vpop.f32.mrf.mxu0 }
 0x965   :  { %v5634_v19 = vadd.f32 %v4072_v14, %v1604_v15  ;;  %v2158_v14 = vld [vmem:[#allocation25 + $0x30] sm:$0xff]  ;;  %v2157_v15 = vld [vmem:[#allocation25 + $0x28] sm:$0xff]  ;;  %v2156_v18 = vld [vmem:[#allocation25 + $0x20] sm:$0xff] }
 0x967   :  { %4484 = vmatmul.mubr.msk.f32.vlgmr.msra.gmra.mxu1 %vm505_vm4, %v5634_v19  ;;  %4495 = vmatmul.mubr.msk.f32.vlgmr.msra.gmra.mxu0 %vm505_vm4, %v5634_v19 }
 0x968   :  { %4498 = vmatpush3.msra.mxu1 %v5618_v60  ;;  %4499 = vmatprep.mubr.msk.f32.mxu1 %vm653_vm5, %v5496_v22 }
 0x969   :  { %4509 = vmatprep.mubr.msk.f32.mxu0 %vm653_vm5, %v5515_v29 }
 0x96b   :  { %4500 = vmatmul.mubr.msk.f32.vlgmr.msra.gmra.mxu1 %vm653_vm5, %v5504_v25 }
 0x96c   :  { %4504 = vmatprep.mubr.msk.f32.mxu1 %vm653_vm5, %v5513_v28 }
 0xa27   :  { %v1687_v23 = vpop.f32.mrf.mxu1  ;;  %v1762_v20 = vpop.f32.mrf.mxu0 }
 0xa28   :  { %4502 = vmatprep.subr.mxu1 %v1762_v20  ;;  %4507 = vmatprep.subr.mxu0 %v1687_v23 }
 0xa29   :  { %v4485_v21 = vpop.f32.mrf.mxu1  ;;  %v4496_v24 = vpop.f32.mrf.mxu0  ;;  %4503 = vmatpush3.msra.mxu1 %v1762_v20  ;;  %4508 = vmatpush3.msra.mxu0 %v1687_v23  ;;  %v4092_v23 = vld [vmem:[#allocation17 + $0x1] ss:$0 sm:$0xff] }
 0xa2a   :  { %4505 = vmatmul.mubr.msk.f32.vlgmr.msra.gmra.mxu1 %vm653_vm5, %v5523_v33  ;;  %4510 = vmatmul.mubr.msk.f32.vlgmr.msra.gmra.mxu0 %vm653_vm5, %v5525_v34 }
 0xa2b   :  { %v5653_v26 = vpop.f32.mrf.mxu1  ;;  %4512 = vmatprep.subr.mxu1 %v2051_v36  ;;  %4523 = vmatprep.subr.mxu0 %v2159_v13 }
 0xa2c   :  { %v1842_v27 = vmul.f32 %v5653_v26, %v5653_v26  ;;  %4513 = vmatpush3.msra.mxu1 %v2051_v36  ;;  %4524 = vmatpush3.msra.mxu0 %v2159_v13 }
 0xa2d   :  { %v5657_v30 = vpop.f32.mrf.mxu1  ;;  %4514 = vmatprep.subr.mxu1 %v2050_v37  ;;  %4525 = vmatprep.subr.mxu0 %v2158_v14 }
 0xa2e   :  { %v1841_v31 = vmul.f32 %v5657_v30, %v5657_v30  ;;  %v1846_v32 = vsel %vm737_vm6, %v1842_v27, 0.0  ;;  %4515 = vmatpush3.msra.mxu1 %v2050_v37  ;;  %4526 = vmatpush3.msra.mxu0 %v2158_v14 }
 0xa2f   :  { %1847 = vadd.xlane.f32.xlu0 %v1846_v32  ;;  %4516 = vmatprep.subr.mxu1 %v2049_v38 }
 0xa30   :  { %v1843_v35 = vsel %vm737_vm6, %v1841_v31, 0.0  ;;  %4517 = vmatpush3.msra.mxu1 %v2049_v38  ;;  %4527 = vmatprep.subr.mxu0 %v2157_v15 }
 0xa31   :  { %1844 = vadd.xlane.f32.xlu1 %v1843_v35  ;;  %4518 = vmatprep.subr.mxu1 %v2048_v41 }
 0xa32   :  { %4519 = vmatpush3.msra.mxu1 %v2048_v41  ;;  %4528 = vmatpush3.msra.mxu0 %v2157_v15 }
 0xa33   :  { %4529 = vmatprep.subr.mxu0 %v2156_v18 }
 0xa34   :  { %4530 = vmatpush3.msra.mxu0 %v2156_v18 }
 0xa35   :  { %4545 = vmatprep.subr.mxu0 %v5246_v0 }
 0xab8   :  { %v1848_v39 = vpop.xlane.xlu0 %1847 }
 0xab9   :  { %v2008_v42 = vmul.f32 %v4089_v17, %v1848_v39 }
 0xaba   :  { %v1845_v40 = vpop.xlane.xlu1 %1844 }
 0xabb   :  { %v2007_v53 = vmul.f32 %v4089_v17, %v1845_v40 }
 0xaea   :  { %v4511_v44 = vpop.f32.mrf.mxu0  ;;  %v4506_v45 = vpop.f32.mrf.mxu1 }
 0xaeb   :  { %v1996_v46 = vadd.f32 %v4511_v44, %v4506_v45  ;;  %v4102_v44 = vld [vmem:[%s5886_s30 + $0x38] sm:$0xff]  ;;  %v4101_v45 = vld [vmem:[%s5886_s30 + $0x30] sm:$0xff] }
 0xaec   :  { %v1915_v47 = vpop.f32.mrf.mxu1  ;;  %v1990_v48 = vpop.f32.mrf.mxu0  ;;  %4534 = vmatprep.subr.mxu1 %v4102_v44 }
 0xaed   :  { %v2010_v52 = vadd.f32 %v2008_v42, %v1996_v46  ;;  %v1991_v55 = vadd.f32 %v1990_v48, %v1915_v47  ;;  %v4100_v46 = vld [vmem:[%s5886_s30 + $0x28] sm:$0xff]  ;;  %v4099_v47 = vld [vmem:[%s5886_s30 + $0x20] sm:$0xff] }
 0xaee   :  { %v4096_v48 = vld [vmem:[%s5887_s0 + $0x1] ss:$0 sm:$0xff] }
 0xaef   :  { %v2022_v58 = vadd.f32 %v2020_v51, %v2010_v52  ;;  %v2009_v59 = vadd.f32 %v2007_v53, %v1991_v55 }
 0xaf1   :  { %v2032_v61 = vadd.f32 %v4091_v56, %v2022_v58  ;;  %v2021_v62 = vadd.f32 %v2019_v57, %v2009_v59 }
 0xaf3   :  { %v2034_v63 = vsub.f32 0.0, %v2032_v61  ;;  %v2031_v1 = vadd.f32 %v4091_v56, %v2021_v62 }
 0xaf5   :  { %v2037_v2 = vmul.f32 1.442695, %v2034_v63  ;;  %v2033_v4 = vsub.f32 0.0, %v2031_v1 }
 0xaf7   :  { %4804 = vpow2.f32 %v2037_v2  ;;  %v2035_v5 = vmul.f32 1.442695, %v2033_v4 }
 0xaf9   :  { %4806 = vpow2.f32 %v2035_v5 }
 0xb04   :  { %v4805_v6 = vpop.eup %4804 }
 0xb05   :  { %v2040_v7 = vadd.f32 1.0, %v4805_v6 }
 0xb06   :  { %v4807_v8 = vpop.eup %4806 }
 0xb07   :  { %v2039_v16 = vadd.f32 1.0, %v4807_v8  ;;  %4808 = vrcp.f32 %v2040_v7  ;;  %v2451_v7 = vld [vmem:[#allocation19 + $0x38] sm:$0xff]  ;;  %v2450_v8 = vld [vmem:[#allocation19 + $0x30] sm:$0xff] }
 0xb09   :  { %4810 = vrcp.f32 %v2039_v16  ;;  %v2449_v16 = vld [vmem:[#allocation19 + $0x28] sm:$0xff] }
 0xb14   :  { %v4809_v9 = vpop.eup %4808 }
 0xb15   :  { %v2046_v12 = vmul.f32 %v4809_v9, %v2032_v61  ;;  %v2448_v9 = vld [vmem:[#allocation19 + $0x20] sm:$0xff] }
 0xb16   :  { %v4811_v10 = vpop.eup %4810 }
 0xb17   :  { %v2045_v11 = vmul.f32 %v4811_v10, %v2031_v1 }
 0xb19   :  { %4520 = vmatprep.mubr.msk.f32.mxu1 %vm505_vm4, %v2045_v11 }
 0xb1a   :  { %4521 = vmatmul.mubr.msk.f32.vlgmr.msra.gmra.mxu1 %vm505_vm4, %v2046_v12 }
 0xb1b   :  { %4535 = vmatpush3.msra.mxu1 %v4102_v44  ;;  %v2617_v44 = vld [vmem:[#allocation23 + $0x20] sm:$0xff] }
 0xb1c   :  { %4536 = vmatprep.subr.mxu1 %v4101_v45 }
 0xb1d   :  { %4537 = vmatpush3.msra.mxu1 %v4101_v45 }
 0xb1e   :  { %4538 = vmatprep.subr.mxu1 %v4100_v46 }
 0xb1f   :  { %4539 = vmatpush3.msra.mxu1 %v4100_v46 }
 0xb20   :  { %4540 = vmatprep.subr.mxu1 %v4099_v47 }
 0xb21   :  { %4541 = vmatpush3.msra.mxu1 %v4099_v47  ;;  %v4108_v47 = vld [vmem:[#allocation22 + $0x1] ss:$0 sm:$0xff] }
 0xb22   :  { %4563 = vmatprep.subr.mxu1 %v5246_v0 }
 0xbda   :  { %v4522_v20 = vpop.f32.mrf.mxu1 }
 0xbdb   :  { %v2138_v21 = vadd.f32 %v4522_v20, %v4092_v23 }
 0xbdc   :  { %v2132_v24 = vpop.f32.mrf.mxu1 }
 0xbdd   :  { %v2142_v27 = vsub.f32 0.0, %v2138_v21  ;;  %v2133_v31 = vadd.f32 %v4092_v23, %v2132_v24 }
 0xbdf   :  { %v2145_v32 = vmul.f32 1.442695, %v2142_v27  ;;  %v2141_v35 = vsub.f32 0.0, %v2133_v31 }
 0xbe1   :  { %4812 = vpow2.f32 %v2145_v32  ;;  %v2143_v36 = vmul.f32 1.442695, %v2141_v35  ;;  %v2453_v32 = vld [vmem:[#allocation20 + $0x20] sm:$0xff] }
 0xbe2   :  { %v4115_v35 = vld [vmem:[%s5879_s17 + $0x58] sm:$0xff] }
 0xbe3   :  { %4814 = vpow2.f32 %v2143_v36  ;;  %v4114_v36 = vld [vmem:[%s5879_s17 + $0x50] sm:$0xff] }
 0xbee   :  { %v4813_v37 = vpop.eup %4812 }
 0xbef   :  { %v2148_v38 = vadd.f32 1.0, %v4813_v37  ;;  %v4113_v37 = vld [vmem:[%s5879_s17 + $0x48] sm:$0xff] }
 0xbf0   :  { %v4815_v41 = vpop.eup %4814 }
 0xbf1   :  { %v2147_v17 = vadd.f32 1.0, %v4815_v41  ;;  %4816 = vrcp.f32 %v2148_v38  ;;  %v4112_v38 = vld [vmem:[%s5879_s17 + $0x40] sm:$0xff] }
 0xbf3   :  { %4818 = vrcp.f32 %v2147_v17 }
 0xbfe   :  { %v4817_v39 = vpop.eup %4816 }
 0xbff   :  { %v5670_v43 = vmul.f32 %v4817_v39, %v2138_v21 }
 0xc00   :  { %v4819_v42 = vpop.eup %4818 }
 0xc01   :  { %v5668_v40 = vmul.f32 %v4819_v42, %v2133_v31  ;;  %v2456_v31 = vld [vmem:[#allocation20 + $0x38] sm:$0xff] }
 0xc02   :  { %v2620_v42 = vld [vmem:[#allocation23 + $0x38] sm:$0xff] }
 0xc03   :  { %4531 = vmatprep.mubr.msk.f32.mxu0 %vm505_vm4, %v5668_v40 }
 0xc04   :  { %4532 = vmatmul.mubr.msk.f32.vlgmr.msra.gmra.mxu0 %vm505_vm4, %v5670_v43 }
 0xc05   :  { %4549 = vmatprep.mubr.msk.f32.mxu0 %vm5247_vm0, %v5246_v0 }
 0xcc4   :  { %v4533_v51 = vpop.f32.mrf.mxu0 }
 0xcc5   :  { %v2246_v52 = vadd.f32 %v4533_v51, %v4096_v48 }
 0xcc6   :  { %v2240_v53 = vpop.f32.mrf.mxu0 }
 0xcc7   :  { %v2250_v55 = vsub.f32 0.0, %v2246_v52  ;;  %v2241_v56 = vadd.f32 %v4096_v48, %v2240_v53 }
 0xcc9   :  { %v2253_v57 = vmul.f32 1.442695, %v2250_v55  ;;  %v2249_v58 = vsub.f32 0.0, %v2241_v56 }
 0xccb   :  { %4820 = vpow2.f32 %v2253_v57  ;;  %v2251_v59 = vmul.f32 1.442695, %v2249_v58 }
 0xccd   :  { %4822 = vpow2.f32 %v2251_v59 }
 0xcd8   :  { %v4821_v61 = vpop.eup %4820 }
 0xcd9   :  { %v2256_v62 = vadd.f32 1.0, %v4821_v61  ;;  %v4119_v61 = vld [vmem:[%s5880_s18 + $0x50] sm:$0xff] }
 0xcda   :  { %v4823_v63 = vpop.eup %4822 }
 0xcdb   :  { %v2255_v1 = vadd.f32 1.0, %v4823_v63  ;;  %4824 = vrcp.f32 %v2256_v62  ;;  %v4118_v62 = vld [vmem:[%s5880_s18 + $0x48] sm:$0xff]  ;;  %v4117_v63 = vld [vmem:[%s5880_s18 + $0x40] sm:$0xff] }
 0xcdd   :  { %4826 = vrcp.f32 %v2255_v1 }
 0xce8   :  { %v4825_v2 = vpop.eup %4824 }
 0xce9   :  { %v2262_v6 = vmul.f32 %v4825_v2, %v2246_v52  ;;  %v4111_v2 = vld [vmem:[%s5888_s5 + $0x1] ss:$0 sm:$0xff] }
 0xcea   :  { %v4827_v4 = vpop.eup %4826 }
 0xceb   :  { %v2261_v5 = vmul.f32 %v4827_v4, %v2241_v56 }
 0xced   :  { %4542 = vmatprep.mubr.msk.f32.mxu1 %vm505_vm4, %v2261_v5 }
 0xcee   :  { %4543 = vmatmul.mubr.msk.f32.vlgmr.msra.gmra.mxu1 %vm505_vm4, %v2262_v6 }
 0xcef   :  { %4564 = vmatpush3.msra.mxu1 %v2451_v7  ;;  %4571 = vmatprep.mubr.msk.f32.mxu1 %vm5247_vm0, %v5246_v0 }
 0xcf0   :  { %4565 = vmatprep.subr.mxu1 %v5246_v0 }
 0xcf1   :  { %4566 = vmatpush3.msra.mxu1 %v2450_v8 }
 0xcf2   :  { %4567 = vmatprep.subr.mxu1 %v5246_v0 }
 0xcf3   :  { %4568 = vmatpush3.msra.mxu1 %v2449_v16 }
 0xcf4   :  { %4569 = vmatprep.subr.mxu1 %v5246_v0 }
 0xcf5   :  { %4570 = vmatpush3.msra.mxu1 %v2448_v9 }
 0xcf6   :  { %4572 = vmatmul.mubr.msk.f32.vlgmr.msra.gmra.mxu1 %vm505_vm4, %v5634_v19  ;;  %4585 = vmatprep.subr.mxu1 %v5246_v0 }
 0xcf7   :  { %4593 = vmatprep.mubr.msk.f32.mxu1 %vm5247_vm0, %v5246_v0  ;;  %4586 = vmatpush3.msra.mxu1 %v4115_v35 }
 0xcf8   :  { %4587 = vmatprep.subr.mxu1 %v5246_v0 }
 0xcf9   :  { %4588 = vmatpush3.msra.mxu1 %v4114_v36  ;;  %v4130_v36 = vld [vmem:[#allocation14 + $0x2] ss:$0 sm:$0xff] }
 0xcfa   :  { %4589 = vmatprep.subr.mxu1 %v5246_v0 }
 0xcfb   :  { %4590 = vmatpush3.msra.mxu1 %v4113_v37 }
 0xcfc   :  { %4591 = vmatprep.subr.mxu1 %v5246_v0 }
 0xcfd   :  { %4592 = vmatpush3.msra.mxu1 %v4112_v38 }
 0xdae   :  { %v4544_v10 = vpop.f32.mrf.mxu1 }
 0xdaf   :  { %2356 = vperm.xlu1 %4772, %v4544_v10  }
 0xdb0   :  { %v2340_v11 = vpop.f32.mrf.mxu1 }
 0xdb3   :  { %2351 = vperm.xlu1 %4772, %v2340_v11   ;;  %v3140_v11 = vld [vmem:[#allocation16 + $0x48] sm:$0xff] }
 0xdb6   :  { %v5696_v12 = vpop.f32.mrf.mxu1 }
 0xdb8   :  { %v4573_v13 = vpop.f32.mrf.mxu1 }
 0xdb9   :  { %v4128_v13 = vld [vmem:[#allocation11 + $0x2] ss:$0 sm:$0xff] }
 0xe2a   :  { %v2357_v14 = vpop.permute.xlu1 %2356 }
 0xe2b   :  { %v2360_v15 = vmul.f32 %v5653_v26, %v2357_v14  ;;  %v2455_v26 = vld [vmem:[#allocation20 + $0x30] sm:$0xff] }
 0xe2d   :  { %2365 = vrot.lane.b32.xlu0 %v2360_v15, %s5250_s23 }
 0xe2e   :  { %v2352_v18 = vpop.permute.xlu1 %2351 }
 0xe2f   :  { %v2359_v23 = vmul.f32 %v2352_v18, %v5657_v30  ;;  %v2454_v30 = vld [vmem:[#allocation20 + $0x28] sm:$0xff] }
 0xe31   :  { %2363 = vrot.lane.b32.xlu1 %v2359_v23, %s5250_s23  ;;  %v4129_v23 = vld [vmem:[#allocation13 + $0x2] ss:$0 sm:$0xff] }
 0xe32   :  { %v3110_v37 = vmul.f32 %v4129_v23, %v5541_v50 }
 0xe9f   :  { %v2366_v20 = vpop.permute.xlu0 %2365 }
 0xea0   :  { %v2370_v21 = vsel %vm505_vm4, %v5670_v43, %v2366_v20  ;;  %v2618_v43 = vld [vmem:[#allocation23 + $0x28] sm:$0xff] }
 0xea1   :  { %4546 = vmatpush3.msra.mxu0 %v2370_v21 }
 0xea2   :  { %4547 = vmatprep.subr.mxu0 %v5246_v0 }
 0xea3   :  { %v2364_v24 = vpop.permute.xlu1 %2363 }
 0xea4   :  { %v2369_v27 = vsel %vm505_vm4, %v5668_v40, %v2364_v24  ;;  %v2619_v40 = vld [vmem:[#allocation23 + $0x30] sm:$0xff] }
 0xea5   :  { %4548 = vmatpush3.msra.mxu0 %v2369_v27 }
 0xea6   :  { %4550 = vmatmul.mubr.msk.f32.vlgmr.msra.gmra.mxu0 %vm334_vm1, %v5464_v3  ;;  %4552 = vmatprep.subr.mxu0 %v5246_v0 }
 0xea7   :  { %4553 = vmatpush3.msra.mxu0 %v2456_v31  ;;  %4560 = vmatprep.mubr.msk.f32.mxu0 %vm5247_vm0, %v5246_v0 }
 0xea8   :  { %4554 = vmatprep.subr.mxu0 %v5246_v0 }
 0xea9   :  { %4555 = vmatpush3.msra.mxu0 %v2455_v26  ;;  %v3111_v26 = vmul.f32 %v4129_v23, %v5543_v54 }
 0xeaa   :  { %4556 = vmatprep.subr.mxu0 %v5246_v0 }
 0xeab   :  { %4557 = vmatpush3.msra.mxu0 %v2454_v30 }
 0xeac   :  { %4558 = vmatprep.subr.mxu0 %v5246_v0 }
 0xead   :  { %4559 = vmatpush3.msra.mxu0 %v2453_v32 }
 0xeae   :  { %4574 = vmatprep.subr.mxu0 %v5246_v0 }
 0xf66   :  { %v2437_v41 = vpop.f32.mrf.mxu0 }
 0xf67   :  { %v2441_v17 = vmul.f32 %v2437_v41, %v5606_v49  ;;  %4561 = vmatmul.mubr.msk.f32.vlgmr.msra.gmra.mxu0 %vm505_vm4, %v2437_v41 }
 0xf68   :  { %v4551_v39 = vpop.f32.mrf.mxu0  ;;  %4582 = vmatprep.mubr.msk.f32.mxu0 %vm5247_vm0, %v5246_v0  ;;  %4575 = vmatpush3.msra.mxu0 %v2620_v42 }
 0xf69   :  { %2443 = vrot.lane.b32.xlu1 %v2441_v17, %s5251_s26  ;;  %4576 = vmatprep.subr.mxu0 %v5246_v0 }
 0xf6a   :  { %4577 = vmatpush3.msra.mxu0 %v2619_v40 }
 0xf6b   :  { %4578 = vmatprep.subr.mxu0 %v5246_v0 }
 0xf6c   :  { %4579 = vmatpush3.msra.mxu0 %v2618_v43 }
 0xf6d   :  { %4580 = vmatprep.subr.mxu0 %v5246_v0 }
 0xf6e   :  { %4581 = vmatpush3.msra.mxu0 %v2617_v44 }
 0xf6f   :  { %4596 = vmatprep.subr.mxu0 %v5246_v0 }
 0xfdb   :  { %v2444_v49 = vpop.permute.xlu1 %2443 }
 0xfdc   :  { %v2446_v45 = vadd.f32 %v2444_v49, %v5618_v60  ;;  %v4120_v60 = vld [vmem:[%s5880_s18 + $0x58] sm:$0xff] }
 0xfde   :  { %4607 = vmatprep.subr.mxu1 %v2446_v45 }
0x1027   :  { %v2526_v46 = vpop.f32.mrf.mxu0 }
0x1028   :  { %v2597_v48 = vadd.f32 %v5696_v12, %v2526_v46  ;;  %v3139_v12 = vld [vmem:[#allocation16 + $0x40] sm:$0xff] }
0x1029   :  { %v4562_v51 = vpop.f32.mrf.mxu0 }
0x102a   :  { %v2608_v52 = vadd.f32 %v4108_v47, %v2597_v48 }
0x102c   :  { %v2609_v53 = vsub.f32 0.0, %v2608_v52 }
0x102e   :  { %v2610_v55 = vmul.f32 1.442695, %v2609_v53  ;;  %v3250_v53 = vld [vmem:[#allocation25 + $0x58] sm:$0xff] }
0x1030   :  { %4828 = vpow2.f32 %v2610_v55  ;;  %v3249_v55 = vld [vmem:[#allocation25 + $0x50] sm:$0xff] }
0x103d   :  { %v4829_v56 = vpop.eup %4828 }
0x103e   :  { %v2612_v57 = vadd.f32 1.0, %v4829_v56  ;;  %v3248_v56 = vld [vmem:[#allocation25 + $0x48] sm:$0xff] }
0x1040   :  { %4830 = vrcp.f32 %v2612_v57  ;;  %v3247_v57 = vld [vmem:[#allocation25 + $0x40] sm:$0xff] }
0x104d   :  { %v4831_v58 = vpop.eup %4830 }
0x104e   :  { %v2615_v59 = vmul.f32 %v4831_v58, %v2608_v52  ;;  %v4131_v58 = vld [vmem:[#allocation17 + $0x2] ss:$0 sm:$0xff] }
0x1050   :  { %4583 = vmatmul.mubr.msk.f32.vlgmr.msra.gmra.mxu0 %vm505_vm4, %v2615_v59 }
0x1051   :  { %4597 = vmatpush3.msra.mxu0 %v4120_v60  ;;  %4604 = vmatprep.mubr.msk.f32.mxu0 %vm5247_vm0, %v5246_v0 }
0x1052   :  { %4598 = vmatprep.subr.mxu0 %v5246_v0 }
0x1053   :  { %4599 = vmatpush3.msra.mxu0 %v4119_v61 }
0x1054   :  { %4600 = vmatprep.subr.mxu0 %v5246_v0 }
0x1055   :  { %4601 = vmatpush3.msra.mxu0 %v4118_v62 }
0x1056   :  { %4602 = vmatprep.subr.mxu0 %v5246_v0 }
0x1057   :  { %4603 = vmatpush3.msra.mxu0 %v4117_v63 }
0x1110   :  { %v2690_v1 = vpop.f32.mrf.mxu0 }
0x1111   :  { %v2694_v4 = vadd.f32 %v2690_v1, %v5634_v19 }
0x1112   :  { %v4584_v5 = vpop.f32.mrf.mxu0 }
0x1113   :  { %v5746_v6 = vadd.f32 %v4111_v2, %v2694_v4 }
0x1115   :  { %4594 = vmatmul.mubr.msk.f32.vlgmr.msra.gmra.mxu1 %vm505_vm4, %v5746_v6  ;;  %4605 = vmatmul.mubr.msk.f32.vlgmr.msra.gmra.mxu0 %vm505_vm4, %v5746_v6 }
0x1116   :  { %4608 = vmatpush3.msra.mxu1 %v2446_v45  ;;  %4609 = vmatprep.mubr.msk.f32.mxu1 %vm653_vm5, %v5496_v22 }
0x1117   :  { %4619 = vmatprep.mubr.msk.f32.mxu0 %vm653_vm5, %v5515_v29 }
0x1119   :  { %4610 = vmatmul.mubr.msk.f32.vlgmr.msra.gmra.mxu1 %vm653_vm5, %v5504_v25 }
0x111a   :  { %4614 = vmatprep.mubr.msk.f32.mxu1 %vm653_vm5, %v5513_v28 }
0x11d5   :  { %v2778_v19 = vpop.f32.mrf.mxu1  ;;  %v2853_v7 = vpop.f32.mrf.mxu0 }
0x11d6   :  { %4612 = vmatprep.subr.mxu1 %v2853_v7  ;;  %4617 = vmatprep.subr.mxu0 %v2778_v19 }
0x11d7   :  { %v4595_v8 = vpop.f32.mrf.mxu1  ;;  %v4606_v16 = vpop.f32.mrf.mxu0  ;;  %4613 = vmatpush3.msra.mxu1 %v2853_v7  ;;  %4618 = vmatpush3.msra.mxu0 %v2778_v19 }
0x11d8   :  { %4615 = vmatmul.mubr.msk.f32.vlgmr.msra.gmra.mxu1 %vm653_vm5, %v5523_v33  ;;  %4620 = vmatmul.mubr.msk.f32.vlgmr.msra.gmra.mxu0 %vm653_vm5, %v5525_v34  ;;  %v3142_v33 = vld [vmem:[#allocation16 + $0x58] sm:$0xff]  ;;  %v3141_v34 = vld [vmem:[#allocation16 + $0x50] sm:$0xff] }
0x11d9   :  { %v5764_v22 = vpop.f32.mrf.mxu1  ;;  %4622 = vmatprep.subr.mxu1 %v3142_v33  ;;  %4633 = vmatprep.subr.mxu0 %v3250_v53 }
0x11da   :  { %v2933_v25 = vmul.f32 %v5764_v22, %v5764_v22  ;;  %4623 = vmatpush3.msra.mxu1 %v3142_v33  ;;  %4634 = vmatpush3.msra.mxu0 %v3250_v53  ;;  %v4140_v33 = vld [vmem:[%s5886_s30 + $0x50] sm:$0xff]  ;;  %v3538_v53 = vld [vmem:[#allocation20 + $0x40] sm:$0xff] }
0x11db   :  { %v5768_v28 = vpop.f32.mrf.mxu1  ;;  %4624 = vmatprep.subr.mxu1 %v3141_v34  ;;  %4635 = vmatprep.subr.mxu0 %v3249_v55 }
0x11dc   :  { %v2932_v29 = vmul.f32 %v5768_v28, %v5768_v28  ;;  %v2937_v9 = vsel %vm737_vm6, %v2933_v25, 0.0  ;;  %4625 = vmatpush3.msra.mxu1 %v3141_v34  ;;  %4636 = vmatpush3.msra.mxu0 %v3249_v55  ;;  %v4139_v34 = vld [vmem:[%s5886_s30 + $0x48] sm:$0xff] }
0x11dd   :  { %2938 = vadd.xlane.f32.xlu0 %v2937_v9  ;;  %4626 = vmatprep.subr.mxu1 %v3140_v11 }
0x11de   :  { %v2934_v10 = vsel %vm737_vm6, %v2932_v29, 0.0  ;;  %4627 = vmatpush3.msra.mxu1 %v3140_v11  ;;  %4637 = vmatprep.subr.mxu0 %v3248_v56  ;;  %v4138_v11 = vld [vmem:[%s5886_s30 + $0x40] sm:$0xff] }
0x11df   :  { %2935 = vadd.xlane.f32.xlu1 %v2934_v10  ;;  %4628 = vmatprep.subr.mxu1 %v3139_v12  ;;  %v4141_v10 = vld [vmem:[%s5886_s30 + $0x58] sm:$0xff] }
0x11e0   :  { %4629 = vmatpush3.msra.mxu1 %v3139_v12  ;;  %4638 = vmatpush3.msra.mxu0 %v3248_v56  ;;  %v4135_v12 = vld [vmem:[%s5887_s0 + $0x2] ss:$0 sm:$0xff]  ;;  %v3705_v56 = vld [vmem:[#allocation23 + $0x58] sm:$0xff] }
0x11e1   :  { %4639 = vmatprep.subr.mxu0 %v3247_v57  ;;  %4644 = vmatprep.subr.mxu1 %v4141_v10 }
0x11e2   :  { %4640 = vmatpush3.msra.mxu0 %v3247_v57  ;;  %v3704_v57 = vld [vmem:[#allocation23 + $0x50] sm:$0xff] }
0x11e3   :  { %4655 = vmatprep.subr.mxu0 %v5246_v0 }
0x1266   :  { %v2939_v14 = vpop.xlane.xlu0 %2938 }
0x1267   :  { %v3099_v15 = vmul.f32 %v4128_v13, %v2939_v14 }
0x1268   :  { %v2936_v18 = vpop.xlane.xlu1 %2935 }
0x1269   :  { %v3098_v35 = vmul.f32 %v4128_v13, %v2936_v18 }
0x1298   :  { %v4621_v20 = vpop.f32.mrf.mxu0  ;;  %v4616_v21 = vpop.f32.mrf.mxu1 }
0x1299   :  { %v3087_v24 = vadd.f32 %v4621_v20, %v4616_v21 }
0x129a   :  { %v3006_v27 = vpop.f32.mrf.mxu1  ;;  %v3081_v31 = vpop.f32.mrf.mxu0 }
0x129b   :  { %v3101_v30 = vadd.f32 %v3099_v15, %v3087_v24  ;;  %v3082_v32 = vadd.f32 %v3081_v31, %v3006_v27 }
0x129d   :  { %v3113_v38 = vadd.f32 %v3111_v26, %v3101_v30  ;;  %v3100_v41 = vadd.f32 %v3098_v35, %v3082_v32 }
0x129f   :  { %v3123_v17 = vadd.f32 %v4130_v36, %v3113_v38  ;;  %v3112_v39 = vadd.f32 %v3110_v37, %v3100_v41  ;;  %v3536_v38 = vld [vmem:[#allocation19 + $0x58] sm:$0xff]  ;;  %v3535_v41 = vld [vmem:[#allocation19 + $0x50] sm:$0xff] }
0x12a1   :  { %v3125_v42 = vsub.f32 0.0, %v3123_v17  ;;  %v3122_v40 = vadd.f32 %v4130_v36, %v3112_v39  ;;  %v3533_v39 = vld [vmem:[#allocation19 + $0x40] sm:$0xff] }
0x12a3   :  { %v3128_v43 = vmul.f32 1.442695, %v3125_v42  ;;  %v3124_v44 = vsub.f32 0.0, %v3122_v40 }
0x12a5   :  { %4832 = vpow2.f32 %v3128_v43  ;;  %v3126_v49 = vmul.f32 1.442695, %v3124_v44 }
0x12a7   :  { %4834 = vpow2.f32 %v3126_v49 }
0x12b2   :  { %v4833_v45 = vpop.eup %4832 }
0x12b3   :  { %v3131_v46 = vadd.f32 1.0, %v4833_v45 }
0x12b4   :  { %v4835_v54 = vpop.eup %4834 }
0x12b5   :  { %v3130_v47 = vadd.f32 1.0, %v4835_v54  ;;  %4836 = vrcp.f32 %v3131_v46 }
0x12b7   :  { %4838 = vrcp.f32 %v3130_v47 }
0x12c2   :  { %v4837_v48 = vpop.eup %4836 }
0x12c3   :  { %v3137_v52 = vmul.f32 %v4837_v48, %v3123_v17  ;;  %v3534_v17 = vld [vmem:[#allocation19 + $0x48] sm:$0xff] }
0x12c4   :  { %v4839_v51 = vpop.eup %4838 }
0x12c5   :  { %v3136_v50 = vmul.f32 %v4839_v51, %v3122_v40 }
0x12c7   :  { %4630 = vmatprep.mubr.msk.f32.mxu1 %vm505_vm4, %v3136_v50 }
0x12c8   :  { %4631 = vmatmul.mubr.msk.f32.vlgmr.msra.gmra.mxu1 %vm505_vm4, %v3137_v52  ;;  %v3541_v52 = vld [vmem:[#allocation20 + $0x58] sm:$0xff] }
0x12c9   :  { %4645 = vmatpush3.msra.mxu1 %v4141_v10  ;;  %v3874_v10 = vlaneseq }
0x12ca   :  { %4646 = vmatprep.subr.mxu1 %v4140_v33 }
0x12cb   :  { %4647 = vmatpush3.msra.mxu1 %v4140_v33  ;;  %v3875_v33 = vshrl.u32 %v3874_v10, 7 }
0x12cc   :  { %4648 = vmatprep.subr.mxu1 %v4139_v34 }
0x12cd   :  { %4649 = vmatpush3.msra.mxu1 %v4139_v34  ;;  %v3873_v34 = vld [vmem:[#allocation7] sm:$0x3] }
0x12ce   :  { %4650 = vmatprep.subr.mxu1 %v4138_v11 }
0x12cf   :  { %4651 = vmatpush3.msra.mxu1 %v4138_v11  ;;  %v3883_v11 = vsub.s32 1, %v3875_v33 }
0x12d0   :  { %4673 = vmatprep.subr.mxu1 %v5246_v0 }
0x1388   :  { %v4632_v59 = vpop.f32.mrf.mxu1 }
0x1389   :  { %v3229_v60 = vadd.f32 %v4632_v59, %v4131_v58  ;;  %v3702_v59 = vld [vmem:[#allocation23 + $0x40] sm:$0xff] }
0x138a   :  { %v3223_v61 = vpop.f32.mrf.mxu1 }
0x138b   :  { %v3233_v62 = vsub.f32 0.0, %v3229_v60  ;;  %v3224_v63 = vadd.f32 %v4131_v58, %v3223_v61  ;;  %v3703_v58 = vld [vmem:[#allocation23 + $0x48] sm:$0xff] }
0x138d   :  { %v3236_v1 = vmul.f32 1.442695, %v3233_v62  ;;  %v3232_v2 = vsub.f32 0.0, %v3224_v63  ;;  %v4147_v62 = vld [vmem:[#allocation22 + $0x2] ss:$0 sm:$0xff] }
0x138f   :  { %4840 = vpow2.f32 %v3236_v1  ;;  %v3234_v4 = vmul.f32 1.442695, %v3232_v2 }
0x1391   :  { %4842 = vpow2.f32 %v3234_v4 }
0x139c   :  { %v4841_v5 = vpop.eup %4840 }
0x139d   :  { %v3239_v19 = vadd.f32 1.0, %v4841_v5 }
0x139e   :  { %v4843_v7 = vpop.eup %4842 }
0x139f   :  { %v3238_v8 = vadd.f32 1.0, %v4843_v7  ;;  %4844 = vrcp.f32 %v3239_v19 }
0x13a1   :  { %4846 = vrcp.f32 %v3238_v8 }
0x13ac   :  { %v4845_v16 = vpop.eup %4844 }
0x13ad   :  { %v5781_v9 = vmul.f32 %v4845_v16, %v3229_v60  ;;  %v3792_v60 = vld [vmem:[%s5889_s28 + $0x18] sm:$0xff] }
0x13ae   :  { %v4847_v25 = vpop.eup %4846 }
0x13af   :  { %v5779_v29 = vmul.f32 %v4847_v25, %v3224_v63  ;;  %v3791_v25 = vld [vmem:[%s5889_s28 + $0x10] sm:$0xff] }
0x13b1   :  { %4641 = vmatprep.mubr.msk.f32.mxu0 %vm505_vm4, %v5779_v29 }
0x13b2   :  { %4642 = vmatmul.mubr.msk.f32.vlgmr.msra.gmra.mxu0 %vm505_vm4, %v5781_v9 }
0x13b3   :  { %4659 = vmatprep.mubr.msk.f32.mxu0 %vm5247_vm0, %v5246_v0 }
0x1472   :  { %v4643_v13 = vpop.f32.mrf.mxu0 }
0x1473   :  { %v3337_v14 = vadd.f32 %v4643_v13, %v4135_v12  ;;  %v3884_v13 = vrot.slane %v3873_v34, %v3883_v11 }
0x1474   :  { %v3331_v15 = vpop.f32.mrf.mxu0 }
0x1475   :  { %v3341_v18 = vsub.f32 0.0, %v3337_v14  ;;  %v3332_v23 = vadd.f32 %v4135_v12, %v3331_v15  ;;  %v3876_v12 = vsub.s32 0, %v3875_v33 }
0x1477   :  { %v3344_v20 = vmul.f32 1.442695, %v3341_v18  ;;  %v3340_v21 = vsub.f32 0.0, %v3332_v23  ;;  %v4150_v18 = vld [vmem:[%s5888_s5 + $0x2] ss:$0 sm:$0xff] }
0x1479   :  { %4848 = vpow2.f32 %v3344_v20  ;;  %v3342_v24 = vmul.f32 1.442695, %v3340_v21 }
0x147b   :  { %4850 = vpow2.f32 %v3342_v24  ;;  %v3907_v24 = vld [vmem:[%s5396_s24 + $0x18] sm:$0xff] }
0x1486   :  { %v4849_v27 = vpop.eup %4848 }
0x1487   :  { %v3347_v31 = vadd.f32 1.0, %v4849_v27  ;;  %v3906_v27 = vld [vmem:[%s5396_s24 + $0x10] sm:$0xff] }
0x1488   :  { %v4851_v26 = vpop.eup %4850 }
0x1489   :  { %v3346_v30 = vadd.f32 1.0, %v4851_v26  ;;  %4852 = vrcp.f32 %v3347_v31  ;;  %v3905_v31 = vld [vmem:[%s5396_s24 + $0x8] sm:$0xff]  ;;  %v3904_v26 = vld [vmem:[%s5396_s24] sm:$0xff] }
0x148b   :  { %4854 = vrcp.f32 %v3346_v30  ;;  %v4151_v30 = vld [vmem:[%s5391_s9] ss:$0 sm:$0xff]  ;;  %s5252_s9 = smov [#allocation26]  }
0x148c   :  { %s3999_s24 = sshll.u32 %s5252_s9, 4  ;;  %s4000_s24 = int_to_ptr.vmem [resolvable:$true] %s3999_s24 }
0x148d   :  { %s5160_s3 = scalar_lea.vmem %s4000_s24, 32  ;;  %p5165_p6 = scmp.lt.s32.totalorder %s4000_s24, %s4000_s24 }
0x148e   :  { %p5161_p5 = scmp.ne.s32.totalorder %s4000_s24, %s5160_s3  ;;  %p5166_p7 = scmp.lt.s32.totalorder %s5160_s3, %s5160_s3 }
0x1490   :  { %p5167_p8 = por %p5166_p7, %p5165_p6 }
0x1492   :  { %p5168_p9 = pnand %p5167_p8, %p5161_p5 }
0x1496   :  { %v4853_v32 = vpop.eup %4852 }
0x1497   :  { %v3353_v37 = vmul.f32 %v4853_v32, %v3337_v14  ;;  %v3877_v14 = vrot.slane %v3873_v34, %v3876_v12 }
0x1498   :  { %v4855_v35 = vpop.eup %4854 }
0x1499   :  { %v3352_v36 = vmul.f32 %v4855_v35, %v3332_v23 }
0x149b   :  { %4652 = vmatprep.mubr.msk.f32.mxu1 %vm505_vm4, %v3352_v36 }
0x149c   :  { %4653 = vmatmul.mubr.msk.f32.vlgmr.msra.gmra.mxu1 %vm505_vm4, %v3353_v37 }
0x149d   :  { %4674 = vmatpush3.msra.mxu1 %v3536_v38  ;;  %4681 = vmatprep.mubr.msk.f32.mxu1 %vm5247_vm0, %v5246_v0 }
0x149e   :  { %4675 = vmatprep.subr.mxu1 %v5246_v0 }
0x149f   :  { %4676 = vmatpush3.msra.mxu1 %v3535_v41 }
0x14a0   :  { %4677 = vmatprep.subr.mxu1 %v5246_v0 }
0x14a1   :  { %4678 = vmatpush3.msra.mxu1 %v3534_v17 }
0x14a2   :  { %4679 = vmatprep.subr.mxu1 %v5246_v0 }
0x14a3   :  { %4680 = vmatpush3.msra.mxu1 %v3533_v39 }
0x14a4   :  { %4682 = vmatmul.mubr.msk.f32.vlgmr.msra.gmra.mxu1 %vm505_vm4, %v5746_v6  ;;  %4695 = vmatprep.subr.mxu1 %v5246_v0 }
0x14a5   :  { %4703 = vmatprep.mubr.msk.f32.mxu1 %vm5247_vm0, %v5246_v0  ;;  %4696 = vmatpush3.msra.mxu1 %v3792_v60 }
0x14a6   :  { %4697 = vmatprep.subr.mxu1 %v5246_v0 }
0x14a7   :  { %4698 = vmatpush3.msra.mxu1 %v3791_v25 }
0x14a8   :  { %4699 = vmatprep.subr.mxu1 %v5246_v0 }
0x155c   :  { %v4654_v42 = vpop.f32.mrf.mxu1 }
0x155d   :  { %3447 = vperm.xlu1 %4772, %v4654_v42  }
0x155e   :  { %v3431_v40 = vpop.f32.mrf.mxu1 }
0x155f   :  { %3442 = vperm.xlu0 %4773, %v3431_v40  }
0x1563   :  { %3886 = vbcast.lane.b32.xlu0 %v3884_v13, 256 }
0x1564   :  { %v3681_v43 = vpop.f32.mrf.mxu1 }
0x1566   :  { %v4683_v44 = vpop.f32.mrf.mxu1 }
0x15d8   :  { %v3448_v49 = vpop.permute.xlu1 %3447 }
0x15d9   :  { %v3451_v45 = vmul.f32 %v5764_v22, %v3448_v49  ;;  %v3540_v22 = vld [vmem:[#allocation20 + $0x50] sm:$0xff] }
0x15da   :  { %v3443_v46 = vpop.permute.xlu0 %3442 }
0x15db   :  { %3456 = vrot.lane.b32.xlu1 %v3451_v45, %s5250_s23  ;;  %v3450_v54 = vmul.f32 %v3443_v46, %v5768_v28  ;;  %v3539_v28 = vld [vmem:[#allocation20 + $0x48] sm:$0xff] }
0x15de   :  { %v3887_v35 = vpop.permute.xlu0 %3886 }
0x15df   :  { %3454 = vrot.lane.b32.xlu1 %v3450_v54, %s5250_s23 }
0x15e3   :  { %3879 = vbcast.lane.b32.xlu1 %v3877_v14, 256 }
0x164d   :  { %v3457_v47 = vpop.permute.xlu1 %3456 }
0x164e   :  { %v3461_v48 = vsel %vm505_vm4, %v5781_v9, %v3457_v47  ;;  %v3789_v9 = vld [vmem:[%s5889_s28] sm:$0xff] }
0x164f   :  { %4656 = vmatpush3.msra.mxu0 %v3461_v48 }
0x1650   :  { %4657 = vmatprep.subr.mxu0 %v5246_v0 }
0x1651   :  { %v3455_v51 = vpop.permute.xlu1 %3454 }
0x1652   :  { %v3460_v50 = vsel %vm505_vm4, %v5779_v29, %v3455_v51  ;;  %v3790_v29 = vld [vmem:[%s5889_s28 + $0x8] sm:$0xff] }
0x1653   :  { %4658 = vmatpush3.msra.mxu0 %v3460_v50  ;;  %4700 = vmatpush3.msra.mxu1 %v3790_v29 }
0x1654   :  { %4660 = vmatmul.mubr.msk.f32.vlgmr.msra.gmra.mxu0 %vm334_vm1, %v5464_v3  ;;  %4662 = vmatprep.subr.mxu0 %v5246_v0 }
0x1655   :  { %4663 = vmatpush3.msra.mxu0 %v3541_v52  ;;  %4670 = vmatprep.mubr.msk.f32.mxu0 %vm5247_vm0, %v5246_v0  ;;  %v4153_v52 = vld [vmem:[%s5401_s19] ss:$0 sm:$0xff] }
0x1656   :  { %4664 = vmatprep.subr.mxu0 %v5246_v0  ;;  %4701 = vmatprep.subr.mxu1 %v5246_v0 }
0x1657   :  { %4665 = vmatpush3.msra.mxu0 %v3540_v22  ;;  %4702 = vmatpush3.msra.mxu1 %v3789_v9 }
0x1658   :  { %4666 = vmatprep.subr.mxu0 %v5246_v0 }
0x1659   :  { %4667 = vmatpush3.msra.mxu0 %v3539_v28 }
0x165a   :  { %4668 = vmatprep.subr.mxu0 %v5246_v0 }
0x165b   :  { %4669 = vmatpush3.msra.mxu0 %v3538_v53 }
0x165c   :  { %4684 = vmatprep.subr.mxu0 %v5246_v0 }
0x1714   :  { %v3528_v3 = vpop.f32.mrf.mxu0 }
0x1715   :  { %4671 = vmatmul.mubr.msk.f32.vlgmr.msra.gmra.mxu0 %vm505_vm4, %v3528_v3 }
0x1716   :  { %v4661_v55 = vpop.f32.mrf.mxu0  ;;  %4692 = vmatprep.mubr.msk.f32.mxu0 %vm5247_vm0, %v5246_v0  ;;  %4685 = vmatpush3.msra.mxu0 %v3705_v56 }
0x1717   :  { %4686 = vmatprep.subr.mxu0 %v5246_v0 }
0x1718   :  { %4687 = vmatpush3.msra.mxu0 %v3704_v57 }
0x1719   :  { %4688 = vmatprep.subr.mxu0 %v5246_v0 }
0x171a   :  { %4689 = vmatpush3.msra.mxu0 %v3703_v58 }
0x171b   :  { %4690 = vmatprep.subr.mxu0 %v5246_v0 }
0x171c   :  { %4691 = vmatpush3.msra.mxu0 %v3702_v59 }
0x171d   :  { %4706 = vmatprep.subr.mxu0 %v5246_v0 }
0x17d5   :  { %v3611_v61 = vpop.f32.mrf.mxu0 }
0x17d6   :  { %v3682_v63 = vadd.f32 %v3681_v43, %v3611_v61 }
0x17d7   :  { %v4672_v1 = vpop.f32.mrf.mxu0 }
0x17d8   :  { %v3693_v2 = vadd.f32 %v4147_v62, %v3682_v63 }
0x17da   :  { %v3694_v4 = vsub.f32 0.0, %v3693_v2 }
0x17dc   :  { %v3695_v5 = vmul.f32 1.442695, %v3694_v4 }
0x17de   :  { %4856 = vpow2.f32 %v3695_v5 }
0x17eb   :  { %v4857_v19 = vpop.eup %4856 }
0x17ec   :  { %v3697_v7 = vadd.f32 1.0, %v4857_v19 }
0x17ee   :  { %4858 = vrcp.f32 %v3697_v7 }
0x17fb   :  { %v4859_v8 = vpop.eup %4858 }
0x17fc   :  { %v3700_v16 = vmul.f32 %v4859_v8, %v3693_v2 }
0x17fe   :  { %4693 = vmatmul.mubr.msk.f32.vlgmr.msra.gmra.mxu0 %vm505_vm4, %v3700_v16 }
0x17ff   :  { %4714 = vmatprep.mubr.msk.f32.mxu0 %vm5247_vm0, %v5246_v0  ;;  %4707 = vmatpush3.msra.mxu0 %v3907_v24 }
0x1800   :  { %4708 = vmatprep.subr.mxu0 %v5246_v0 }
0x1801   :  { %4709 = vmatpush3.msra.mxu0 %v3906_v27 }
0x1802   :  { %4710 = vmatprep.subr.mxu0 %v5246_v0 }
0x1803   :  { %4711 = vmatpush3.msra.mxu0 %v3905_v31 }
0x1804   :  { %4712 = vmatprep.subr.mxu0 %v5246_v0 }
0x1805   :  { %4713 = vmatpush3.msra.mxu0 %v3904_v26 }
0x18be   :  { %v3775_v15 = vpop.f32.mrf.mxu0 }
0x18bf   :  { %v3779_v23 = vadd.f32 %v3775_v15, %v5746_v6  ;;  %v3880_v6 = vpop.permute.xlu1 %3879 }
0x18c0   :  { %v4694_v20 = vpop.f32.mrf.mxu0 }
0x18c1   :  { %v3788_v21 = vadd.f32 %v4150_v18, %v3779_v23 }
0x18c3   :  { %4704 = vmatmul.mubr.msk.f32.vlgmr.msra.gmra.mxu1 %vm505_vm4, %v3788_v21 }
0x1983   :  { %v3869_v32 = vpop.f32.mrf.mxu1 }
0x1984   :  { %v3870_v36 = vadd.f32 %v4151_v30, %v3869_v32 }
0x1985   :  { %v4705_v37 = vpop.f32.mrf.mxu1 }
0x1986   :  { %v3888_v38 = vadd.f32 %v3880_v6, %v3870_v36  ;;  %v3889_v41 = vadd.f32 %v3887_v35, %v3870_v36 }
0x1988   :  { %v3890_v17 = vsel %vm505_vm4, %v3888_v38, -inf  ;;  %v3897_v39 = vsel %vm505_vm4, %v3889_v41, -inf }
0x1989   :  { %v3891_v42 = vrot.slane %v3890_v17, 4  ;;  %v3898_v40 = vrot.slane %v3897_v39, 4 }
0x198b   :  { %v3892_v43 = vmax.f32 %v3890_v17, %v3891_v42  ;;  %v3899_v44 = vmax.f32 %v3897_v39, %v3898_v40 }
0x198d   :  { %v3893_v49 = vrot.slane %v3892_v43, 2  ;;  %v3900_v0 = vrot.slane %v3899_v44, 2 }
0x198f   :  { %v3894_v45 = vmax.f32 %v3892_v43, %v3893_v49  ;;  %v3901_v46 = vmax.f32 %v3899_v44, %v3900_v0 }
0x1991   :  { %v3895_v54 = vrot.slane %v3894_v45, 1  ;;  %v3902_v47 = vrot.slane %v3901_v46, 1 }
0x1993   :  { %v3896_v48 = vmax.f32 %v3894_v45, %v3895_v54  ;;  %v3903_v51 = vmax.f32 %v3901_v46, %v3902_v47 }
0x1995   :  { %v3918_v50 = vsel %vm3917_vm7, %v3903_v51, %v3896_v48 }
0x1996   :  { %4715 = vmatmul.mubr.msk.f32.vlgmr.msra.gmra.mxu0 %vm505_vm4, %v3918_v50 }
0x1a56   :  { %v3987_v22 = vpop.f32.mrf.mxu0 }
0x1a57   :  { %v3988_v28 = vadd.f32 %v4153_v52, %v3987_v22 }
0x1a58   :  { %v4716_v53 = vpop.f32.mrf.mxu0 }
0x1a59   :  { %3992 = vst.msk [vmem:[#allocation26] sm:$0x3] %vm3991_vm8, %v3988_v28 }
0x1a5a   :  { %5171 = shalt.err (!%p5168_p9)
}
0x1a5b   :  { %4002 = dma.vmem_to_hbm [thread:$0]  %s4000_s24, 32, %s5406_s25, [#allocation4]  }
0x1a5c   :  { %5196 = dma.done.wait [#allocation4], 32  }
0x1a5d   :  { %5197 = vsyncadd [#allocation4], 4294967264 }
0x1a5e   :  { %4006 = vsyncpa [#allocation3], 1 }
0x1a5f   :  { %4007 = vsyncpa [#allocation6], 1 }
0x1a60   :  { %4008 = vsyncpa [#allocation9], 1 }
0x1a61   :  { %4009 = vsyncpa [#allocation12], 1 }
0x1a62   :  { %4010 = vsyncpa [#allocation15], 1 }
0x1a63   :  { %4011 = vsyncpa [#allocation18], 1 }
0x1a64   :  { %4012 = vsyncpa [#allocation21], 1 }
0x1a65   :  { %4013 = vsyncpa [#allocation24], 1 }
0x1a66   :  { %4014 = vsyncpa [#allocation4], 1 }

</bundles_post_ra>
